<compile_context>
chip_gen: v6e
topology: v6e:2x2x1
jax: 0.10.0
libtpu: 0.0.40
codegen_flags: <defaults>
</compile_context>

<pallas_src>
import functools

import jax
import jax.numpy as jnp
from jax.experimental import pallas as pl
from jax.experimental.pallas import tpu as pltpu


# ----------------------------------------------------------------------------
# helpers
# ----------------------------------------------------------------------------
def _round_up(x, m):
    return (x + m - 1) // m * m


_VMEM_LIMIT = 48 * 1024 * 1024  # safe on v5e/v6e (128 MiB phys) and v7x (64 MiB)


# ----------------------------------------------------------------------------
# Tiled MXU matmul kernel (bf16 operands, f32 accumulation, fused epilogue act)
# ----------------------------------------------------------------------------
def _matmul_kernel(a_ref, b_ref, o_ref, acc_ref, *, act):
    @pl.when(pl.program_id(2) == 0)
    def _():
        acc_ref[...] = jnp.zeros_like(acc_ref)

    acc_ref[...] += jnp.dot(
        a_ref[...], b_ref[...], preferred_element_type=jnp.float32
    )

    @pl.when(pl.program_id(2) == pl.num_programs(2) - 1)
    def _():
        r = acc_ref[...]
        if act == "leaky":
            r = jnp.where(r > 0, r, 0.2 * r)
        elif act == "tanh":
            r = jnp.tanh(r)
        o_ref[...] = r


def pallas_matmul(a, b, act="none"):
    """a: [M, K], b: [K, C] -> [M, C] f32.  bf16 MXU operands, f32 accumulate.

    Tiled grid (M/tm, N/tn, K/tk) with double-buffered HBM<->VMEM pipelining;
    M/N axes parallel (megacore), K axis is the reduction (arbitrary, last).
    """
    M, K = a.shape
    _, C = b.shape

    # --- tile / padded-shape selection (bf16 => M multiples of 16) -----------
    Mp = _round_up(M, 16)
    if Mp <= 256:
        tm = Mp
    else:
        tm = 256
        Mp = _round_up(M, 256)
    Kp = _round_up(K, 128)
    tk = next(t for t in (512, 256, 128) if Kp % t == 0)
    Np = _round_up(C, 128)
    tn = 256 if Np % 256 == 0 else 128

    a_p = a.astype(jnp.bfloat16)
    if (Mp, Kp) != (M, K):
        a_p = jnp.pad(a_p, ((0, Mp - M), (0, Kp - K)))
    b_p = b.astype(jnp.bfloat16)
    if (Kp, Np) != (K, C):
        b_p = jnp.pad(b_p, ((0, Kp - K), (0, Np - C)))

    out = pl.pallas_call(
        functools.partial(_matmul_kernel, act=act),
        out_shape=jax.ShapeDtypeStruct((Mp, Np), jnp.float32),
        grid_spec=pltpu.PrefetchScalarGridSpec(
            num_scalar_prefetch=0,
            grid=(Mp // tm, Np // tn, Kp // tk),
            in_specs=[
                pl.BlockSpec((tm, tk), lambda i, j, k: (i, k)),
                pl.BlockSpec((tk, tn), lambda i, j, k: (k, j)),
            ],
            out_specs=pl.BlockSpec((tm, tn), lambda i, j, k: (i, j)),
            scratch_shapes=[pltpu.VMEM((tm, tn), jnp.float32)],
        ),
        compiler_params=pltpu.CompilerParams(
            dimension_semantics=("parallel", "parallel", "arbitrary"),
            vmem_limit_bytes=_VMEM_LIMIT,
        ),
    )(a_p, b_p)
    if (Mp, Np) != (M, C):
        out = out[:M, :C]
    return out


# ----------------------------------------------------------------------------
# Fused InstanceNorm + activation (+ residual) kernel, tiled over (N, C-blocks)
# ----------------------------------------------------------------------------
def _postproc_kernel(x_ref, *rest, do_in, act, residual):
    # block: [1, HW, tc];  IN reduces the full spatial axis (exact per-(N,C)).
    if residual:
        r_ref, o_ref = rest
    else:
        (o_ref,) = rest
    x = x_ref[...]
    if do_in:
        # InstanceNorm2d (affine=False, eps=1e-5), single-pass biased variance.
        mean = jnp.mean(x, axis=1, keepdims=True)
        msq = jnp.mean(x * x, axis=1, keepdims=True)
        var = jnp.maximum(msq - mean * mean, 0.0)
        x = (x - mean) * jax.lax.rsqrt(var + 1e-5)
    if act == "leaky":
        x = jnp.where(x > 0, x, 0.2 * x)
    elif act == "relu":
        x = jnp.maximum(x, 0.0)
    elif act == "tanh":
        x = jnp.tanh(x)
    if residual:
        x = x + r_ref[...]
    o_ref[...] = x


def pallas_postproc(x, *, do_in, act, residual=None):
    """x: [N, HW, C] f32 -> [N, HW, C] f32, fused IN / activation / residual."""
    N, HW, C = x.shape
    if C % 128 == 0:
        tc = 256 if C % 256 == 0 else 128
    else:
        tc = C  # full-dim block (allowed), small layers only
    args = (x,) if residual is None else (x, residual)
    spec = pl.BlockSpec((1, HW, tc), lambda n, c: (n, 0, c))
    kern = functools.partial(
        _postproc_kernel, do_in=do_in, act=act, residual=residual is not None
    )
    return pl.pallas_call(
        kern,
        out_shape=jax.ShapeDtypeStruct(x.shape, jnp.float32),
        grid_spec=pltpu.PrefetchScalarGridSpec(
            num_scalar_prefetch=0,
            grid=(N, C // tc),
            in_specs=[spec] * len(args),
            out_specs=spec,
        ),
        compiler_params=pltpu.CompilerParams(
            dimension_semantics=("parallel", "parallel"),
            vmem_limit_bytes=_VMEM_LIMIT,
        ),
    )(*args)


# ----------------------------------------------------------------------------
# Conv / ConvTranspose built on the Pallas matmul kernel
# ----------------------------------------------------------------------------
def _im2col(x, kh, kw, stride, pad_t, pad_b, pad_l, pad_r):
    # x: [N, H, W, C] -> patches [N*Ho*Wo, kh*kw*C]
    N, H, W, C = x.shape
    xp = jnp.pad(x, ((0, 0), (pad_t, pad_b), (pad_l, pad_r), (0, 0)))
    Ho = (H + pad_t + pad_b - kh) // stride + 1
    Wo = (W + pad_l + pad_r - kw) // stride + 1
    cols = []
    for i in range(kh):
        for j in range(kw):
            cols.append(xp[:, i:i + stride * Ho:stride, j:j + stride * Wo:stride, :])
    patches = jnp.stack(cols, axis=3)  # [N, Ho, Wo, kh*kw, C]
    return patches.reshape(N * Ho * Wo, kh * kw * C), (N, Ho, Wo)


def conv2d(x, w_oihw, stride, pad, act="none"):
    # x: [N,H,W,Cin]; w: [Cout,Cin,kh,kw] (PyTorch Conv2d layout, bias=False)
    Cout, Cin, kh, kw = w_oihw.shape
    x = x.astype(jnp.bfloat16)  # patches materialize directly in bf16
    patches, (N, Ho, Wo) = _im2col(x, kh, kw, stride, pad, pad, pad, pad)
    wmat = jnp.transpose(w_oihw, (2, 3, 1, 0)).reshape(kh * kw * Cin, Cout)
    out = pallas_matmul(patches, wmat.astype(jnp.bfloat16), act=act)
    return out.reshape(N, Ho, Wo, Cout)


def conv_transpose2d(x, w_iohw, act="none"):
    """ConvTranspose2d(k=4, s=2, p=1, bias=False) via exact sub-pixel decomposition.

    Four stride-1 2x2 convs on the undilated input (one per output parity),
    interleaved into the 2x-upsampled output -> 4x less MXU work / im2col bytes
    than zero-dilation.
    """
    Cin, Cout, kh, kw = w_iohw.shape
    assert kh == 4 and kw == 4
    N, H, W, _ = x.shape
    x = x.astype(jnp.bfloat16)
    # Equivalent forward-conv weight: swap in/out channels, flip spatially.
    w_f = jnp.transpose(w_iohw, (1, 0, 2, 3))[:, :, ::-1, ::-1]  # [Cout,Cin,4,4]

    rows = []
    for py in range(2):
        row = []
        for px in range(2):
            w_sub = w_f[:, :, py::2, px::2]  # [Cout, Cin, 2, 2]
            pad_t, pad_b = (1, 0) if py == 0 else (0, 1)
            pad_l, pad_r = (1, 0) if px == 0 else (0, 1)
            patches, (_, Ho, Wo) = _im2col(x, 2, 2, 1, pad_t, pad_b, pad_l, pad_r)
            wmat = jnp.transpose(w_sub, (2, 3, 1, 0)).reshape(4 * Cin, Cout)
            y = pallas_matmul(patches, wmat.astype(jnp.bfloat16), act=act)
            row.append(y.reshape(N, Ho, Wo, Cout))
        rows.append(row)
    # Interleave the 4 phases: out[:, 2m+py, 2n+px, :] = rows[py][px][:, m, n, :]
    y = jnp.stack([jnp.stack(r, axis=3) for r in rows], axis=2)  # [N,H,2,W,2,C]
    return y.reshape(N, 2 * H, 2 * W, Cout)


# ----------------------------------------------------------------------------
# CycleGenerator
# ----------------------------------------------------------------------------
def init_params(key, conv_dim=64, n_res_blocks=6):
    def nrm(k, shape, scale=0.05):
        return scale * jax.random.normal(k, shape, jnp.float32)

    keys = jax.random.split(key, 6 + 2 * n_res_blocks)
    params = {
        "conv1": nrm(keys[0], (conv_dim, 3, 4, 4)),                   # Conv2d OIHW
        "conv2": nrm(keys[1], (conv_dim * 2, conv_dim, 4, 4)),
        "conv3": nrm(keys[2], (conv_dim * 4, conv_dim * 2, 4, 4)),
        "deconv4": nrm(keys[3], (conv_dim * 4, conv_dim * 2, 4, 4)),  # ConvT IOHW
        "deconv5": nrm(keys[4], (conv_dim * 2, conv_dim, 4, 4)),
        "deconv6": nrm(keys[5], (conv_dim, 3, 4, 4)),
        "res": [
            (
                nrm(keys[6 + 2 * i], (conv_dim * 4, conv_dim * 4, 3, 3)),
                nrm(keys[7 + 2 * i], (conv_dim * 4, conv_dim * 4, 3, 3)),
            )
            for i in range(n_res_blocks)
        ],
    }
    return params


def cycle_generator_forward(params, x_nchw):
    x = jnp.transpose(x_nchw, (0, 2, 3, 1)).astype(jnp.float32)  # NCHW -> NHWC

    def apply(y, do_in, act, residual=None):
        N, Ho, Wo, C = y.shape
        y2 = y.reshape(N, Ho * Wo, C)
        r2 = None if residual is None else residual.reshape(N, Ho * Wo, C)
        out = pallas_postproc(y2, do_in=do_in, act=act, residual=r2)
        return out.reshape(N, Ho, Wo, C)

    # Encoder (conv1 has no IN -> leaky fused into the matmul epilogue)
    out = conv2d(x, params["conv1"], stride=2, pad=1, act="leaky")
    out = conv2d(out, params["conv2"], stride=2, pad=1)
    out = apply(out, do_in=True, act="leaky")
    out = conv2d(out, params["conv3"], stride=2, pad=1)
    out = apply(out, do_in=True, act="leaky")

    # Residual blocks: out = x + IN(conv2(relu(IN(conv1(x)))))
    for w1, w2 in params["res"]:
        h = conv2d(out, w1, stride=1, pad=1)
        h = apply(h, do_in=True, act="relu")
        h = conv2d(h, w2, stride=1, pad=1)
        out = apply(h, do_in=True, act="none", residual=out)

    # Decoder (sub-pixel ConvTranspose; deconv6 has no IN -> tanh fused)
    out = conv_transpose2d(out, params["deconv4"])
    out = apply(out, do_in=True, act="leaky")
    out = conv_transpose2d(out, params["deconv5"])
    out = apply(out, do_in=True, act="leaky")
    out = conv_transpose2d(out, params["deconv6"], act="tanh")

    return jnp.transpose(out, (0, 3, 1, 2))  # NHWC -> NCHW


if __name__ == "__main__":
    key = jax.random.PRNGKey(0)
    pkey, xkey = jax.random.split(key)

    # Small but structure-preserving config: 3 stride-2 downsamples need H,W >= 8.
    conv_dim, n_res_blocks = 32, 2
    params = init_params(pkey, conv_dim=conv_dim, n_res_blocks=n_res_blocks)

    x = jax.random.normal(xkey, (2, 3, 16, 16), jnp.float32)  # NCHW input

    fwd = jax.jit(functools.partial(cycle_generator_forward, params))
    y = fwd(x)
    jax.block_until_ready(y)
    assert y.shape == (2, 3, 16, 16) and y.dtype == jnp.float32
    assert bool(jnp.all(jnp.isfinite(y)))
    print("KERNEL_OK")
</pallas_src>

<mosaic_0001>
module attributes {stable_mosaic.version = 11 : i64} {
  func.func @_matmul_kernel(%arg0: i32, %arg1: i32, %arg2: i32, %arg3: memref<128x128xbf16, #tpu.memory_space<vmem>>, %arg4: memref<128x128xbf16, #tpu.memory_space<vmem>>, %arg5: memref<128x128xf32, #tpu.memory_space<vmem>>, %arg6: memref<128x128xf32, #tpu.memory_space<vmem>>) attributes {dimension_semantics = [#tpu.dimension_semantics<parallel>, #tpu.dimension_semantics<parallel>, #tpu.dimension_semantics<arbitrary>], iteration_bounds = array<i64: 1, 1, 1>, scalar_prefetch = 0 : i64, scratch_operands = 1 : i64, tpu.core_type = #tpu.core_type<tc>, window_params = [{transform_indices = @transform_0, window_bounds = array<i64: 128, 128>}, {transform_indices = @transform_1, window_bounds = array<i64: 128, 128>}, {transform_indices = @transform_2, window_bounds = array<i64: 128, 128>}]} {
    %c0_i32 = arith.constant 0 : i32
    %0 = arith.cmpi eq, %arg2, %c0_i32 : i32
    %1 = arith.extui %0 : i1 to i32
    %c0_i32_0 = arith.constant 0 : i32
    %2 = arith.cmpi ne, %1, %c0_i32_0 : i32
    scf.if %2 {
      %cst_10 = arith.constant 0.000000e+00 : f32
      %12 = vector.broadcast %cst_10 : f32 to vector<128x128xf32>
      %c0_11 = arith.constant 0 : index
      %c0_12 = arith.constant 0 : index
      %13 = vector.load %arg6[%c0_11, %c0_12] : memref<128x128xf32, #tpu.memory_space<vmem>>, vector<128x128xf32>
      tpu.vector_store %arg6[%c0_11, %c0_12], %12 {strides = array<i32>} : memref<128x128xf32, #tpu.memory_space<vmem>>, vector<128x128xf32>,
    } else {
    }
    %c0 = arith.constant 0 : index
    %c0_1 = arith.constant 0 : index
    %3 = vector.load %arg6[%c0, %c0_1] : memref<128x128xf32, #tpu.memory_space<vmem>>, vector<128x128xf32>
    %c0_2 = arith.constant 0 : index
    %c0_3 = arith.constant 0 : index
    %4 = vector.load %arg3[%c0_2, %c0_3] : memref<128x128xbf16, #tpu.memory_space<vmem>>, vector<128x128xbf16>
    %c0_4 = arith.constant 0 : index
    %c0_5 = arith.constant 0 : index
    %5 = vector.load %arg4[%c0_4, %c0_5] : memref<128x128xbf16, #tpu.memory_space<vmem>>, vector<128x128xbf16>
    %cst = arith.constant dense<0.000000e+00> : vector<128x128xf32>
    %6 = tpu.matmul %4, %5, %cst {dimension_numbers = #tpu.dot_dimension_numbers<[1], [0], [0], [1], [0, 0, 1, 1], [], []>} : vector<128x128xbf16>, vector<128x128xbf16>, vector<128x128xf32> -> vector<128x128xf32>
    %7 = arith.addf %3, %6 : vector<128x128xf32>
    %c0_6 = arith.constant 0 : index
    %c0_7 = arith.constant 0 : index
    %8 = vector.load %arg6[%c0_6, %c0_7] : memref<128x128xf32, #tpu.memory_space<vmem>>, vector<128x128xf32>
    tpu.vector_store %arg6[%c0_6, %c0_7], %7 {strides = array<i32>} : memref<128x128xf32, #tpu.memory_space<vmem>>, vector<128x128xf32>,
    %c0_i32_8 = arith.constant 0 : i32
    %9 = arith.cmpi eq, %arg2, %c0_i32_8 : i32
    %10 = arith.extui %9 : i1 to i32
    %c0_i32_9 = arith.constant 0 : i32
    %11 = arith.cmpi ne, %10, %c0_i32_9 : i32
    scf.if %11 {
      %c0_10 = arith.constant 0 : index
      %c0_11 = arith.constant 0 : index
      %12 = vector.load %arg6[%c0_10, %c0_11] : memref<128x128xf32, #tpu.memory_space<vmem>>, vector<128x128xf32>
      %cst_12 = arith.constant 0.000000e+00 : f32
      %13 = vector.broadcast %cst_12 : f32 to vector<128x128xf32>
      %14 = arith.cmpf ogt, %12, %13 : vector<128x128xf32>
      %cst_13 = arith.constant 2.000000e-01 : f32
      %15 = vector.broadcast %cst_13 : f32 to vector<128x128xf32>
      %16 = arith.mulf %15, %12 : vector<128x128xf32>
      %17 = arith.select %14, %12, %16 : vector<128x128xi1>, vector<128x128xf32>
      %c0_14 = arith.constant 0 : index
      %c0_15 = arith.constant 0 : index
      %18 = vector.load %arg5[%c0_14, %c0_15] : memref<128x128xf32, #tpu.memory_space<vmem>>, vector<128x128xf32>
      tpu.vector_store %arg5[%c0_14, %c0_15], %17 {strides = array<i32>} : memref<128x128xf32, #tpu.memory_space<vmem>>, vector<128x128xf32>,
    } else {
    }
    return
  }
  func.func @transform_0(%arg0: i32, %arg1: i32, %arg2: i32) -> (i32, i32) {
    %c0_i32 = arith.constant 0 : i32
    return %arg0, %arg2 : i32, i32
  }
  func.func @transform_1(%arg0: i32, %arg1: i32, %arg2: i32) -> (i32, i32) {
    %c0_i32 = arith.constant 0 : i32
    return %arg2, %arg1 : i32, i32
  }
  func.func @transform_2(%arg0: i32, %arg1: i32, %arg2: i32) -> (i32, i32) {
    %c0_i32 = arith.constant 0 : i32
    return %arg0, %arg1 : i32, i32
  }
}

module attributes {stable_mosaic.version = 11 : i64} {
  func.func @_postproc_kernel(%arg0: i32, %arg1: i32, %arg2: memref<1x16x64xf32, #tpu.memory_space<vmem>>, %arg3: memref<1x16x64xf32, #tpu.memory_space<vmem>>) attributes {dimension_semantics = [#tpu.dimension_semantics<parallel>, #tpu.dimension_semantics<parallel>], iteration_bounds = array<i64: 2, 1>, scalar_prefetch = 0 : i64, scratch_operands = 0 : i64, tpu.core_type = #tpu.core_type<tc>, window_params = [{transform_indices = @transform_0, window_bounds = array<i64: 1, 16, 64>}, {transform_indices = @transform_1, window_bounds = array<i64: 1, 16, 64>}]} {
    %c0 = arith.constant 0 : index
    %c0_0 = arith.constant 0 : index
    %c0_1 = arith.constant 0 : index
    %0 = vector.load %arg2[%c0, %c0_0, %c0_1] : memref<1x16x64xf32, #tpu.memory_space<vmem>>, vector<1x16x64xf32>
    %cst = arith.constant dense<0.000000e+00> : vector<1x64xf32>
    %1 = vector.multi_reduction <add>, %0, %cst [1] : vector<1x16x64xf32> to vector<1x64xf32>
    %2 = vector.shape_cast %1 : vector<1x64xf32> to vector<1x1x64xf32>
    %cst_2 = arith.constant 1.600000e+01 : f32
    %3 = vector.broadcast %cst_2 : f32 to vector<1x1x64xf32>
    %4 = arith.divf %2, %3 : vector<1x1x64xf32>
    %5 = arith.mulf %0, %0 : vector<1x16x64xf32>
    %cst_3 = arith.constant dense<0.000000e+00> : vector<1x64xf32>
    %6 = vector.multi_reduction <add>, %5, %cst_3 [1] : vector<1x16x64xf32> to vector<1x64xf32>
    %7 = vector.shape_cast %6 : vector<1x64xf32> to vector<1x1x64xf32>
    %cst_4 = arith.constant 1.600000e+01 : f32
    %8 = vector.broadcast %cst_4 : f32 to vector<1x1x64xf32>
    %9 = arith.divf %7, %8 : vector<1x1x64xf32>
    %10 = arith.mulf %4, %4 : vector<1x1x64xf32>
    %11 = arith.subf %9, %10 : vector<1x1x64xf32>
    %cst_5 = arith.constant 0.000000e+00 : f32
    %12 = vector.broadcast %cst_5 : f32 to vector<1x1x64xf32>
    %13 = arith.maximumf %11, %12 : vector<1x1x64xf32>
    %14 = vector.broadcast %4 : vector<1x1x64xf32> to vector<1x16x64xf32>
    %15 = arith.subf %0, %14 : vector<1x16x64xf32>
    %cst_6 = arith.constant 9.99999974E-6 : f32
    %16 = vector.broadcast %cst_6 : f32 to vector<1x1x64xf32>
    %17 = arith.addf %13, %16 : vector<1x1x64xf32>
    %18 = math.rsqrt %17 : vector<1x1x64xf32>
    %19 = vector.broadcast %18 : vector<1x1x64xf32> to vector<1x16x64xf32>
    %20 = arith.mulf %15, %19 : vector<1x16x64xf32>
    %cst_7 = arith.constant 0.000000e+00 : f32
    %21 = vector.broadcast %cst_7 : f32 to vector<1x16x64xf32>
    %22 = arith.cmpf ogt, %20, %21 : vector<1x16x64xf32>
    %cst_8 = arith.constant 2.000000e-01 : f32
    %23 = vector.broadcast %cst_8 : f32 to vector<1x16x64xf32>
    %24 = arith.mulf %23, %20 : vector<1x16x64xf32>
    %25 = arith.select %22, %20, %24 : vector<1x16x64xi1>, vector<1x16x64xf32>
    %c0_9 = arith.constant 0 : index
    %c0_10 = arith.constant 0 : index
    %c0_11 = arith.constant 0 : index
    %26 = vector.load %arg3[%c0_9, %c0_10, %c0_11] : memref<1x16x64xf32, #tpu.memory_space<vmem>>, vector<1x16x64xf32>
    tpu.vector_store %arg3[%c0_9, %c0_10, %c0_11], %25 {strides = array<i32>} : memref<1x16x64xf32, #tpu.memory_space<vmem>>, vector<1x16x64xf32>,
    return
  }
  func.func @transform_0(%arg0: i32, %arg1: i32) -> (i32, i32, i32) {
    %c0_i32 = arith.constant 0 : i32
    %c0_i32_0 = arith.constant 0 : i32
    return %arg0, %c0_i32, %arg1 : i32, i32, i32
  }
  func.func @transform_1(%arg0: i32, %arg1: i32) -> (i32, i32, i32) {
    %c0_i32 = arith.constant 0 : i32
    %c0_i32_0 = arith.constant 0 : i32
    return %arg0, %c0_i32, %arg1 : i32, i32, i32
  }
}

module attributes {stable_mosaic.version = 11 : i64} {
  func.func @_matmul_kernel(%arg0: i32, %arg1: i32, %arg2: i32, %arg3: memref<32x512xbf16, #tpu.memory_space<vmem>>, %arg4: memref<512x128xbf16, #tpu.memory_space<vmem>>, %arg5: memref<32x128xf32, #tpu.memory_space<vmem>>, %arg6: memref<32x128xf32, #tpu.memory_space<vmem>>) attributes {dimension_semantics = [#tpu.dimension_semantics<parallel>, #tpu.dimension_semantics<parallel>, #tpu.dimension_semantics<arbitrary>], iteration_bounds = array<i64: 1, 1, 1>, scalar_prefetch = 0 : i64, scratch_operands = 1 : i64, tpu.core_type = #tpu.core_type<tc>, window_params = [{transform_indices = @transform_0, window_bounds = array<i64: 32, 512>}, {transform_indices = @transform_1, window_bounds = array<i64: 512, 128>}, {transform_indices = @transform_2, window_bounds = array<i64: 32, 128>}]} {
    %c0_i32 = arith.constant 0 : i32
    %0 = arith.cmpi eq, %arg2, %c0_i32 : i32
    %1 = arith.extui %0 : i1 to i32
    %c0_i32_0 = arith.constant 0 : i32
    %2 = arith.cmpi ne, %1, %c0_i32_0 : i32
    scf.if %2 {
      %cst_10 = arith.constant 0.000000e+00 : f32
      %12 = vector.broadcast %cst_10 : f32 to vector<32x128xf32>
      %c0_11 = arith.constant 0 : index
      %c0_12 = arith.constant 0 : index
      %13 = vector.load %arg6[%c0_11, %c0_12] : memref<32x128xf32, #tpu.memory_space<vmem>>, vector<32x128xf32>
      tpu.vector_store %arg6[%c0_11, %c0_12], %12 {strides = array<i32>} : memref<32x128xf32, #tpu.memory_space<vmem>>, vector<32x128xf32>,
    } else {
    }
    %c0 = arith.constant 0 : index
    %c0_1 = arith.constant 0 : index
    %3 = vector.load %arg6[%c0, %c0_1] : memref<32x128xf32, #tpu.memory_space<vmem>>, vector<32x128xf32>
    %c0_2 = arith.constant 0 : index
    %c0_3 = arith.constant 0 : index
    %4 = vector.load %arg3[%c0_2, %c0_3] : memref<32x512xbf16, #tpu.memory_space<vmem>>, vector<32x512xbf16>
    %c0_4 = arith.constant 0 : index
    %c0_5 = arith.constant 0 : index
    %5 = vector.load %arg4[%c0_4, %c0_5] : memref<512x128xbf16, #tpu.memory_space<vmem>>, vector<512x128xbf16>
    %cst = arith.constant dense<0.000000e+00> : vector<32x128xf32>
    %6 = tpu.matmul %4, %5, %cst {dimension_numbers = #tpu.dot_dimension_numbers<[1], [0], [0], [1], [0, 0, 1, 1], [], []>} : vector<32x512xbf16>, vector<512x128xbf16>, vector<32x128xf32> -> vector<32x128xf32>
    %7 = arith.addf %3, %6 : vector<32x128xf32>
    %c0_6 = arith.constant 0 : index
    %c0_7 = arith.constant 0 : index
    %8 = vector.load %arg6[%c0_6, %c0_7] : memref<32x128xf32, #tpu.memory_space<vmem>>, vector<32x128xf32>
    tpu.vector_store %arg6[%c0_6, %c0_7], %7 {strides = array<i32>} : memref<32x128xf32, #tpu.memory_space<vmem>>, vector<32x128xf32>,
    %c0_i32_8 = arith.constant 0 : i32
    %9 = arith.cmpi eq, %arg2, %c0_i32_8 : i32
    %10 = arith.extui %9 : i1 to i32
    %c0_i32_9 = arith.constant 0 : i32
    %11 = arith.cmpi ne, %10, %c0_i32_9 : i32
    scf.if %11 {
      %c0_10 = arith.constant 0 : index
      %c0_11 = arith.constant 0 : index
      %12 = vector.load %arg6[%c0_10, %c0_11] : memref<32x128xf32, #tpu.memory_space<vmem>>, vector<32x128xf32>
      %c0_12 = arith.constant 0 : index
      %c0_13 = arith.constant 0 : index
      %13 = vector.load %arg5[%c0_12, %c0_13] : memref<32x128xf32, #tpu.memory_space<vmem>>, vector<32x128xf32>
      tpu.vector_store %arg5[%c0_12, %c0_13], %12 {strides = array<i32>} : memref<32x128xf32, #tpu.memory_space<vmem>>, vector<32x128xf32>,
    } else {
    }
    return
  }
  func.func @transform_0(%arg0: i32, %arg1: i32, %arg2: i32) -> (i32, i32) {
    %c0_i32 = arith.constant 0 : i32
    return %arg0, %arg2 : i32, i32
  }
  func.func @transform_1(%arg0: i32, %arg1: i32, %arg2: i32) -> (i32, i32) {
    %c0_i32 = arith.constant 0 : i32
    return %arg2, %arg1 : i32, i32
  }
  func.func @transform_2(%arg0: i32, %arg1: i32, %arg2: i32) -> (i32, i32) {
    %c0_i32 = arith.constant 0 : i32
    return %arg0, %arg1 : i32, i32
  }
}

module attributes {stable_mosaic.version = 11 : i64} {
  func.func @_matmul_kernel(%arg0: i32, %arg1: i32, %arg2: i32, %arg3: memref<16x512xbf16, #tpu.memory_space<vmem>>, %arg4: memref<512x128xbf16, #tpu.memory_space<vmem>>, %arg5: memref<16x128xf32, #tpu.memory_space<vmem>>, %arg6: memref<16x128xf32, #tpu.memory_space<vmem>>) attributes {dimension_semantics = [#tpu.dimension_semantics<parallel>, #tpu.dimension_semantics<parallel>, #tpu.dimension_semantics<arbitrary>], iteration_bounds = array<i64: 1, 1, 2>, scalar_prefetch = 0 : i64, scratch_operands = 1 : i64, tpu.core_type = #tpu.core_type<tc>, window_params = [{transform_indices = @transform_0, window_bounds = array<i64: 16, 512>}, {transform_indices = @transform_1, window_bounds = array<i64: 512, 128>}, {transform_indices = @transform_2, window_bounds = array<i64: 16, 128>}]} {
    %c0_i32 = arith.constant 0 : i32
    %0 = arith.cmpi eq, %arg2, %c0_i32 : i32
    %1 = arith.extui %0 : i1 to i32
    %c0_i32_0 = arith.constant 0 : i32
    %2 = arith.cmpi ne, %1, %c0_i32_0 : i32
    scf.if %2 {
      %cst_9 = arith.constant 0.000000e+00 : f32
      %12 = vector.broadcast %cst_9 : f32 to vector<16x128xf32>
      %c0_10 = arith.constant 0 : index
      %c0_11 = arith.constant 0 : index
      %13 = vector.load %arg6[%c0_10, %c0_11] : memref<16x128xf32, #tpu.memory_space<vmem>>, vector<16x128xf32>
      tpu.vector_store %arg6[%c0_10, %c0_11], %12 {strides = array<i32>} : memref<16x128xf32, #tpu.memory_space<vmem>>, vector<16x128xf32>,
    } else {
    }
    %c0 = arith.constant 0 : index
    %c0_1 = arith.constant 0 : index
    %3 = vector.load %arg6[%c0, %c0_1] : memref<16x128xf32, #tpu.memory_space<vmem>>, vector<16x128xf32>
    %c0_2 = arith.constant 0 : index
    %c0_3 = arith.constant 0 : index
    %4 = vector.load %arg3[%c0_2, %c0_3] : memref<16x512xbf16, #tpu.memory_space<vmem>>, vector<16x512xbf16>
    %c0_4 = arith.constant 0 : index
    %c0_5 = arith.constant 0 : index
    %5 = vector.load %arg4[%c0_4, %c0_5] : memref<512x128xbf16, #tpu.memory_space<vmem>>, vector<512x128xbf16>
    %cst = arith.constant dense<0.000000e+00> : vector<16x128xf32>
    %6 = tpu.matmul %4, %5, %cst {dimension_numbers = #tpu.dot_dimension_numbers<[1], [0], [0], [1], [0, 0, 1, 1], [], []>} : vector<16x512xbf16>, vector<512x128xbf16>, vector<16x128xf32> -> vector<16x128xf32>
    %7 = arith.addf %3, %6 : vector<16x128xf32>
    %c0_6 = arith.constant 0 : index
    %c0_7 = arith.constant 0 : index
    %8 = vector.load %arg6[%c0_6, %c0_7] : memref<16x128xf32, #tpu.memory_space<vmem>>, vector<16x128xf32>
    tpu.vector_store %arg6[%c0_6, %c0_7], %7 {strides = array<i32>} : memref<16x128xf32, #tpu.memory_space<vmem>>, vector<16x128xf32>,
    %c1_i32 = arith.constant 1 : i32
    %9 = arith.cmpi eq, %arg2, %c1_i32 : i32
    %10 = arith.extui %9 : i1 to i32
    %c0_i32_8 = arith.constant 0 : i32
    %11 = arith.cmpi ne, %10, %c0_i32_8 : i32
    scf.if %11 {
      %c0_9 = arith.constant 0 : index
      %c0_10 = arith.constant 0 : index
      %12 = vector.load %arg6[%c0_9, %c0_10] : memref<16x128xf32, #tpu.memory_space<vmem>>, vector<16x128xf32>
      %c0_11 = arith.constant 0 : index
      %c0_12 = arith.constant 0 : index
      %13 = vector.load %arg5[%c0_11, %c0_12] : memref<16x128xf32, #tpu.memory_space<vmem>>, vector<16x128xf32>
      tpu.vector_store %arg5[%c0_11, %c0_12], %12 {strides = array<i32>} : memref<16x128xf32, #tpu.memory_space<vmem>>, vector<16x128xf32>,
    } else {
    }
    return
  }
  func.func @transform_0(%arg0: i32, %arg1: i32, %arg2: i32) -> (i32, i32) {
    %c0_i32 = arith.constant 0 : i32
    return %arg0, %arg2 : i32, i32
  }
  func.func @transform_1(%arg0: i32, %arg1: i32, %arg2: i32) -> (i32, i32) {
    %c0_i32 = arith.constant 0 : i32
    return %arg2, %arg1 : i32, i32
  }
  func.func @transform_2(%arg0: i32, %arg1: i32, %arg2: i32) -> (i32, i32) {
    %c0_i32 = arith.constant 0 : i32
    return %arg0, %arg1 : i32, i32
  }
}

module attributes {stable_mosaic.version = 11 : i64} {
  func.func @_postproc_kernel(%arg0: i32, %arg1: i32, %arg2: memref<1x4x128xf32, #tpu.memory_space<vmem>>, %arg3: memref<1x4x128xf32, #tpu.memory_space<vmem>>) attributes {dimension_semantics = [#tpu.dimension_semantics<parallel>, #tpu.dimension_semantics<parallel>], iteration_bounds = array<i64: 2, 1>, scalar_prefetch = 0 : i64, scratch_operands = 0 : i64, tpu.core_type = #tpu.core_type<tc>, window_params = [{transform_indices = @transform_0, window_bounds = array<i64: 1, 4, 128>}, {transform_indices = @transform_1, window_bounds = array<i64: 1, 4, 128>}]} {
    %c0 = arith.constant 0 : index
    %c0_0 = arith.constant 0 : index
    %c0_1 = arith.constant 0 : index
    %0 = vector.load %arg2[%c0, %c0_0, %c0_1] : memref<1x4x128xf32, #tpu.memory_space<vmem>>, vector<1x4x128xf32>
    %cst = arith.constant dense<0.000000e+00> : vector<1x128xf32>
    %1 = vector.multi_reduction <add>, %0, %cst [1] : vector<1x4x128xf32> to vector<1x128xf32>
    %2 = vector.shape_cast %1 : vector<1x128xf32> to vector<1x1x128xf32>
    %cst_2 = arith.constant 4.000000e+00 : f32
    %3 = vector.broadcast %cst_2 : f32 to vector<1x1x128xf32>
    %4 = arith.divf %2, %3 : vector<1x1x128xf32>
    %5 = arith.mulf %0, %0 : vector<1x4x128xf32>
    %cst_3 = arith.constant dense<0.000000e+00> : vector<1x128xf32>
    %6 = vector.multi_reduction <add>, %5, %cst_3 [1] : vector<1x4x128xf32> to vector<1x128xf32>
    %7 = vector.shape_cast %6 : vector<1x128xf32> to vector<1x1x128xf32>
    %cst_4 = arith.constant 4.000000e+00 : f32
    %8 = vector.broadcast %cst_4 : f32 to vector<1x1x128xf32>
    %9 = arith.divf %7, %8 : vector<1x1x128xf32>
    %10 = arith.mulf %4, %4 : vector<1x1x128xf32>
    %11 = arith.subf %9, %10 : vector<1x1x128xf32>
    %cst_5 = arith.constant 0.000000e+00 : f32
    %12 = vector.broadcast %cst_5 : f32 to vector<1x1x128xf32>
    %13 = arith.maximumf %11, %12 : vector<1x1x128xf32>
    %14 = vector.broadcast %4 : vector<1x1x128xf32> to vector<1x4x128xf32>
    %15 = arith.subf %0, %14 : vector<1x4x128xf32>
    %cst_6 = arith.constant 9.99999974E-6 : f32
    %16 = vector.broadcast %cst_6 : f32 to vector<1x1x128xf32>
    %17 = arith.addf %13, %16 : vector<1x1x128xf32>
    %18 = math.rsqrt %17 : vector<1x1x128xf32>
    %19 = vector.broadcast %18 : vector<1x1x128xf32> to vector<1x4x128xf32>
    %20 = arith.mulf %15, %19 : vector<1x4x128xf32>
    %cst_7 = arith.constant 0.000000e+00 : f32
    %21 = vector.broadcast %cst_7 : f32 to vector<1x4x128xf32>
    %22 = arith.cmpf ogt, %20, %21 : vector<1x4x128xf32>
    %cst_8 = arith.constant 2.000000e-01 : f32
    %23 = vector.broadcast %cst_8 : f32 to vector<1x4x128xf32>
    %24 = arith.mulf %23, %20 : vector<1x4x128xf32>
    %25 = arith.select %22, %20, %24 : vector<1x4x128xi1>, vector<1x4x128xf32>
    %c0_9 = arith.constant 0 : index
    %c0_10 = arith.constant 0 : index
    %c0_11 = arith.constant 0 : index
    %26 = vector.load %arg3[%c0_9, %c0_10, %c0_11] : memref<1x4x128xf32, #tpu.memory_space<vmem>>, vector<1x4x128xf32>
    tpu.vector_store %arg3[%c0_9, %c0_10, %c0_11], %25 {strides = array<i32>} : memref<1x4x128xf32, #tpu.memory_space<vmem>>, vector<1x4x128xf32>,
    return
  }
  func.func @transform_0(%arg0: i32, %arg1: i32) -> (i32, i32, i32) {
    %c0_i32 = arith.constant 0 : i32
    %c0_i32_0 = arith.constant 0 : i32
    return %arg0, %c0_i32, %arg1 : i32, i32, i32
  }
  func.func @transform_1(%arg0: i32, %arg1: i32) -> (i32, i32, i32) {
    %c0_i32 = arith.constant 0 : i32
    %c0_i32_0 = arith.constant 0 : i32
    return %arg0, %c0_i32, %arg1 : i32, i32, i32
  }
}

module attributes {stable_mosaic.version = 11 : i64} {
  func.func @_postproc_kernel(%arg0: i32, %arg1: i32, %arg2: memref<1x4x128xf32, #tpu.memory_space<vmem>>, %arg3: memref<1x4x128xf32, #tpu.memory_space<vmem>>) attributes {dimension_semantics = [#tpu.dimension_semantics<parallel>, #tpu.dimension_semantics<parallel>], iteration_bounds = array<i64: 2, 1>, scalar_prefetch = 0 : i64, scratch_operands = 0 : i64, tpu.core_type = #tpu.core_type<tc>, window_params = [{transform_indices = @transform_0, window_bounds = array<i64: 1, 4, 128>}, {transform_indices = @transform_1, window_bounds = array<i64: 1, 4, 128>}]} {
    %c0 = arith.constant 0 : index
    %c0_0 = arith.constant 0 : index
    %c0_1 = arith.constant 0 : index
    %0 = vector.load %arg2[%c0, %c0_0, %c0_1] : memref<1x4x128xf32, #tpu.memory_space<vmem>>, vector<1x4x128xf32>
    %cst = arith.constant dense<0.000000e+00> : vector<1x128xf32>
    %1 = vector.multi_reduction <add>, %0, %cst [1] : vector<1x4x128xf32> to vector<1x128xf32>
    %2 = vector.shape_cast %1 : vector<1x128xf32> to vector<1x1x128xf32>
    %cst_2 = arith.constant 4.000000e+00 : f32
    %3 = vector.broadcast %cst_2 : f32 to vector<1x1x128xf32>
    %4 = arith.divf %2, %3 : vector<1x1x128xf32>
    %5 = arith.mulf %0, %0 : vector<1x4x128xf32>
    %cst_3 = arith.constant dense<0.000000e+00> : vector<1x128xf32>
    %6 = vector.multi_reduction <add>, %5, %cst_3 [1] : vector<1x4x128xf32> to vector<1x128xf32>
    %7 = vector.shape_cast %6 : vector<1x128xf32> to vector<1x1x128xf32>
    %cst_4 = arith.constant 4.000000e+00 : f32
    %8 = vector.broadcast %cst_4 : f32 to vector<1x1x128xf32>
    %9 = arith.divf %7, %8 : vector<1x1x128xf32>
    %10 = arith.mulf %4, %4 : vector<1x1x128xf32>
    %11 = arith.subf %9, %10 : vector<1x1x128xf32>
    %cst_5 = arith.constant 0.000000e+00 : f32
    %12 = vector.broadcast %cst_5 : f32 to vector<1x1x128xf32>
    %13 = arith.maximumf %11, %12 : vector<1x1x128xf32>
    %14 = vector.broadcast %4 : vector<1x1x128xf32> to vector<1x4x128xf32>
    %15 = arith.subf %0, %14 : vector<1x4x128xf32>
    %cst_6 = arith.constant 9.99999974E-6 : f32
    %16 = vector.broadcast %cst_6 : f32 to vector<1x1x128xf32>
    %17 = arith.addf %13, %16 : vector<1x1x128xf32>
    %18 = math.rsqrt %17 : vector<1x1x128xf32>
    %19 = vector.broadcast %18 : vector<1x1x128xf32> to vector<1x4x128xf32>
    %20 = arith.mulf %15, %19 : vector<1x4x128xf32>
    %cst_7 = arith.constant 0.000000e+00 : f32
    %21 = vector.broadcast %cst_7 : f32 to vector<1x4x128xf32>
    %22 = arith.maximumf %20, %21 : vector<1x4x128xf32>
    %c0_8 = arith.constant 0 : index
    %c0_9 = arith.constant 0 : index
    %c0_10 = arith.constant 0 : index
    %23 = vector.load %arg3[%c0_8, %c0_9, %c0_10] : memref<1x4x128xf32, #tpu.memory_space<vmem>>, vector<1x4x128xf32>
    tpu.vector_store %arg3[%c0_8, %c0_9, %c0_10], %22 {strides = array<i32>} : memref<1x4x128xf32, #tpu.memory_space<vmem>>, vector<1x4x128xf32>,
    return
  }
  func.func @transform_0(%arg0: i32, %arg1: i32) -> (i32, i32, i32) {
    %c0_i32 = arith.constant 0 : i32
    %c0_i32_0 = arith.constant 0 : i32
    return %arg0, %c0_i32, %arg1 : i32, i32, i32
  }
  func.func @transform_1(%arg0: i32, %arg1: i32) -> (i32, i32, i32) {
    %c0_i32 = arith.constant 0 : i32
    %c0_i32_0 = arith.constant 0 : i32
    return %arg0, %c0_i32, %arg1 : i32, i32, i32
  }
}

module attributes {stable_mosaic.version = 11 : i64} {
  func.func @_matmul_kernel(%arg0: i32, %arg1: i32, %arg2: i32, %arg3: memref<16x128xbf16, #tpu.memory_space<vmem>>, %arg4: memref<128x128xbf16, #tpu.memory_space<vmem>>, %arg5: memref<16x128xf32, #tpu.memory_space<vmem>>, %arg6: memref<16x128xf32, #tpu.memory_space<vmem>>) attributes {dimension_semantics = [#tpu.dimension_semantics<parallel>, #tpu.dimension_semantics<parallel>, #tpu.dimension_semantics<arbitrary>], iteration_bounds = array<i64: 1, 1, 9>, scalar_prefetch = 0 : i64, scratch_operands = 1 : i64, tpu.core_type = #tpu.core_type<tc>, window_params = [{transform_indices = @transform_0, window_bounds = array<i64: 16, 128>}, {transform_indices = @transform_1, window_bounds = array<i64: 128, 128>}, {transform_indices = @transform_2, window_bounds = array<i64: 16, 128>}]} {
    %c0_i32 = arith.constant 0 : i32
    %0 = arith.cmpi eq, %arg2, %c0_i32 : i32
    %1 = arith.extui %0 : i1 to i32
    %c0_i32_0 = arith.constant 0 : i32
    %2 = arith.cmpi ne, %1, %c0_i32_0 : i32
    scf.if %2 {
      %cst_9 = arith.constant 0.000000e+00 : f32
      %12 = vector.broadcast %cst_9 : f32 to vector<16x128xf32>
      %c0_10 = arith.constant 0 : index
      %c0_11 = arith.constant 0 : index
      %13 = vector.load %arg6[%c0_10, %c0_11] : memref<16x128xf32, #tpu.memory_space<vmem>>, vector<16x128xf32>
      tpu.vector_store %arg6[%c0_10, %c0_11], %12 {strides = array<i32>} : memref<16x128xf32, #tpu.memory_space<vmem>>, vector<16x128xf32>,
    } else {
    }
    %c0 = arith.constant 0 : index
    %c0_1 = arith.constant 0 : index
    %3 = vector.load %arg6[%c0, %c0_1] : memref<16x128xf32, #tpu.memory_space<vmem>>, vector<16x128xf32>
    %c0_2 = arith.constant 0 : index
    %c0_3 = arith.constant 0 : index
    %4 = vector.load %arg3[%c0_2, %c0_3] : memref<16x128xbf16, #tpu.memory_space<vmem>>, vector<16x128xbf16>
    %c0_4 = arith.constant 0 : index
    %c0_5 = arith.constant 0 : index
    %5 = vector.load %arg4[%c0_4, %c0_5] : memref<128x128xbf16, #tpu.memory_space<vmem>>, vector<128x128xbf16>
    %cst = arith.constant dense<0.000000e+00> : vector<16x128xf32>
    %6 = tpu.matmul %4, %5, %cst {dimension_numbers = #tpu.dot_dimension_numbers<[1], [0], [0], [1], [0, 0, 1, 1], [], []>} : vector<16x128xbf16>, vector<128x128xbf16>, vector<16x128xf32> -> vector<16x128xf32>
    %7 = arith.addf %3, %6 : vector<16x128xf32>
    %c0_6 = arith.constant 0 : index
    %c0_7 = arith.constant 0 : index
    %8 = vector.load %arg6[%c0_6, %c0_7] : memref<16x128xf32, #tpu.memory_space<vmem>>, vector<16x128xf32>
    tpu.vector_store %arg6[%c0_6, %c0_7], %7 {strides = array<i32>} : memref<16x128xf32, #tpu.memory_space<vmem>>, vector<16x128xf32>,
    %c8_i32 = arith.constant 8 : i32
    %9 = arith.cmpi eq, %arg2, %c8_i32 : i32
    %10 = arith.extui %9 : i1 to i32
    %c0_i32_8 = arith.constant 0 : i32
    %11 = arith.cmpi ne, %10, %c0_i32_8 : i32
    scf.if %11 {
      %c0_9 = arith.constant 0 : index
      %c0_10 = arith.constant 0 : index
      %12 = vector.load %arg6[%c0_9, %c0_10] : memref<16x128xf32, #tpu.memory_space<vmem>>, vector<16x128xf32>
      %c0_11 = arith.constant 0 : index
      %c0_12 = arith.constant 0 : index
      %13 = vector.load %arg5[%c0_11, %c0_12] : memref<16x128xf32, #tpu.memory_space<vmem>>, vector<16x128xf32>
      tpu.vector_store %arg5[%c0_11, %c0_12], %12 {strides = array<i32>} : memref<16x128xf32, #tpu.memory_space<vmem>>, vector<16x128xf32>,
    } else {
    }
    return
  }
  func.func @transform_0(%arg0: i32, %arg1: i32, %arg2: i32) -> (i32, i32) {
    %c0_i32 = arith.constant 0 : i32
    return %arg0, %arg2 : i32, i32
  }
  func.func @transform_1(%arg0: i32, %arg1: i32, %arg2: i32) -> (i32, i32) {
    %c0_i32 = arith.constant 0 : i32
    return %arg2, %arg1 : i32, i32
  }
  func.func @transform_2(%arg0: i32, %arg1: i32, %arg2: i32) -> (i32, i32) {
    %c0_i32 = arith.constant 0 : i32
    return %arg0, %arg1 : i32, i32
  }
}

module attributes {stable_mosaic.version = 11 : i64} {
  func.func @_postproc_kernel(%arg0: i32, %arg1: i32, %arg2: memref<1x4x128xf32, #tpu.memory_space<vmem>>, %arg3: memref<1x4x128xf32, #tpu.memory_space<vmem>>, %arg4: memref<1x4x128xf32, #tpu.memory_space<vmem>>) attributes {dimension_semantics = [#tpu.dimension_semantics<parallel>, #tpu.dimension_semantics<parallel>], iteration_bounds = array<i64: 2, 1>, scalar_prefetch = 0 : i64, scratch_operands = 0 : i64, tpu.core_type = #tpu.core_type<tc>, window_params = [{transform_indices = @transform_0, window_bounds = array<i64: 1, 4, 128>}, {transform_indices = @transform_1, window_bounds = array<i64: 1, 4, 128>}, {transform_indices = @transform_2, window_bounds = array<i64: 1, 4, 128>}]} {
    %c0 = arith.constant 0 : index
    %c0_0 = arith.constant 0 : index
    %c0_1 = arith.constant 0 : index
    %0 = vector.load %arg2[%c0, %c0_0, %c0_1] : memref<1x4x128xf32, #tpu.memory_space<vmem>>, vector<1x4x128xf32>
    %cst = arith.constant dense<0.000000e+00> : vector<1x128xf32>
    %1 = vector.multi_reduction <add>, %0, %cst [1] : vector<1x4x128xf32> to vector<1x128xf32>
    %2 = vector.shape_cast %1 : vector<1x128xf32> to vector<1x1x128xf32>
    %cst_2 = arith.constant 4.000000e+00 : f32
    %3 = vector.broadcast %cst_2 : f32 to vector<1x1x128xf32>
    %4 = arith.divf %2, %3 : vector<1x1x128xf32>
    %5 = arith.mulf %0, %0 : vector<1x4x128xf32>
    %cst_3 = arith.constant dense<0.000000e+00> : vector<1x128xf32>
    %6 = vector.multi_reduction <add>, %5, %cst_3 [1] : vector<1x4x128xf32> to vector<1x128xf32>
    %7 = vector.shape_cast %6 : vector<1x128xf32> to vector<1x1x128xf32>
    %cst_4 = arith.constant 4.000000e+00 : f32
    %8 = vector.broadcast %cst_4 : f32 to vector<1x1x128xf32>
    %9 = arith.divf %7, %8 : vector<1x1x128xf32>
    %10 = arith.mulf %4, %4 : vector<1x1x128xf32>
    %11 = arith.subf %9, %10 : vector<1x1x128xf32>
    %cst_5 = arith.constant 0.000000e+00 : f32
    %12 = vector.broadcast %cst_5 : f32 to vector<1x1x128xf32>
    %13 = arith.maximumf %11, %12 : vector<1x1x128xf32>
    %14 = vector.broadcast %4 : vector<1x1x128xf32> to vector<1x4x128xf32>
    %15 = arith.subf %0, %14 : vector<1x4x128xf32>
    %cst_6 = arith.constant 9.99999974E-6 : f32
    %16 = vector.broadcast %cst_6 : f32 to vector<1x1x128xf32>
    %17 = arith.addf %13, %16 : vector<1x1x128xf32>
    %18 = math.rsqrt %17 : vector<1x1x128xf32>
    %19 = vector.broadcast %18 : vector<1x1x128xf32> to vector<1x4x128xf32>
    %20 = arith.mulf %15, %19 : vector<1x4x128xf32>
    %c0_7 = arith.constant 0 : index
    %c0_8 = arith.constant 0 : index
    %c0_9 = arith.constant 0 : index
    %21 = vector.load %arg3[%c0_7, %c0_8, %c0_9] : memref<1x4x128xf32, #tpu.memory_space<vmem>>, vector<1x4x128xf32>
    %22 = arith.addf %20, %21 : vector<1x4x128xf32>
    %c0_10 = arith.constant 0 : index
    %c0_11 = arith.constant 0 : index
    %c0_12 = arith.constant 0 : index
    %23 = vector.load %arg4[%c0_10, %c0_11, %c0_12] : memref<1x4x128xf32, #tpu.memory_space<vmem>>, vector<1x4x128xf32>
    tpu.vector_store %arg4[%c0_10, %c0_11, %c0_12], %22 {strides = array<i32>} : memref<1x4x128xf32, #tpu.memory_space<vmem>>, vector<1x4x128xf32>,
    return
  }
  func.func @transform_0(%arg0: i32, %arg1: i32) -> (i32, i32, i32) {
    %c0_i32 = arith.constant 0 : i32
    %c0_i32_0 = arith.constant 0 : i32
    return %arg0, %c0_i32, %arg1 : i32, i32, i32
  }
  func.func @transform_1(%arg0: i32, %arg1: i32) -> (i32, i32, i32) {
    %c0_i32 = arith.constant 0 : i32
    %c0_i32_0 = arith.constant 0 : i32
    return %arg0, %c0_i32, %arg1 : i32, i32, i32
  }
  func.func @transform_2(%arg0: i32, %arg1: i32) -> (i32, i32, i32) {
    %c0_i32 = arith.constant 0 : i32
    %c0_i32_0 = arith.constant 0 : i32
    return %arg0, %c0_i32, %arg1 : i32, i32, i32
  }
}

module attributes {stable_mosaic.version = 11 : i64} {
  func.func @_matmul_kernel(%arg0: i32, %arg1: i32, %arg2: i32, %arg3: memref<16x512xbf16, #tpu.memory_space<vmem>>, %arg4: memref<512x128xbf16, #tpu.memory_space<vmem>>, %arg5: memref<16x128xf32, #tpu.memory_space<vmem>>, %arg6: memref<16x128xf32, #tpu.memory_space<vmem>>) attributes {dimension_semantics = [#tpu.dimension_semantics<parallel>, #tpu.dimension_semantics<parallel>, #tpu.dimension_semantics<arbitrary>], iteration_bounds = array<i64: 1, 1, 1>, scalar_prefetch = 0 : i64, scratch_operands = 1 : i64, tpu.core_type = #tpu.core_type<tc>, window_params = [{transform_indices = @transform_0, window_bounds = array<i64: 16, 512>}, {transform_indices = @transform_1, window_bounds = array<i64: 512, 128>}, {transform_indices = @transform_2, window_bounds = array<i64: 16, 128>}]} {
    %c0_i32 = arith.constant 0 : i32
    %0 = arith.cmpi eq, %arg2, %c0_i32 : i32
    %1 = arith.extui %0 : i1 to i32
    %c0_i32_0 = arith.constant 0 : i32
    %2 = arith.cmpi ne, %1, %c0_i32_0 : i32
    scf.if %2 {
      %cst_10 = arith.constant 0.000000e+00 : f32
      %12 = vector.broadcast %cst_10 : f32 to vector<16x128xf32>
      %c0_11 = arith.constant 0 : index
      %c0_12 = arith.constant 0 : index
      %13 = vector.load %arg6[%c0_11, %c0_12] : memref<16x128xf32, #tpu.memory_space<vmem>>, vector<16x128xf32>
      tpu.vector_store %arg6[%c0_11, %c0_12], %12 {strides = array<i32>} : memref<16x128xf32, #tpu.memory_space<vmem>>, vector<16x128xf32>,
    } else {
    }
    %c0 = arith.constant 0 : index
    %c0_1 = arith.constant 0 : index
    %3 = vector.load %arg6[%c0, %c0_1] : memref<16x128xf32, #tpu.memory_space<vmem>>, vector<16x128xf32>
    %c0_2 = arith.constant 0 : index
    %c0_3 = arith.constant 0 : index
    %4 = vector.load %arg3[%c0_2, %c0_3] : memref<16x512xbf16, #tpu.memory_space<vmem>>, vector<16x512xbf16>
    %c0_4 = arith.constant 0 : index
    %c0_5 = arith.constant 0 : index
    %5 = vector.load %arg4[%c0_4, %c0_5] : memref<512x128xbf16, #tpu.memory_space<vmem>>, vector<512x128xbf16>
    %cst = arith.constant dense<0.000000e+00> : vector<16x128xf32>
    %6 = tpu.matmul %4, %5, %cst {dimension_numbers = #tpu.dot_dimension_numbers<[1], [0], [0], [1], [0, 0, 1, 1], [], []>} : vector<16x512xbf16>, vector<512x128xbf16>, vector<16x128xf32> -> vector<16x128xf32>
    %7 = arith.addf %3, %6 : vector<16x128xf32>
    %c0_6 = arith.constant 0 : index
    %c0_7 = arith.constant 0 : index
    %8 = vector.load %arg6[%c0_6, %c0_7] : memref<16x128xf32, #tpu.memory_space<vmem>>, vector<16x128xf32>
    tpu.vector_store %arg6[%c0_6, %c0_7], %7 {strides = array<i32>} : memref<16x128xf32, #tpu.memory_space<vmem>>, vector<16x128xf32>,
    %c0_i32_8 = arith.constant 0 : i32
    %9 = arith.cmpi eq, %arg2, %c0_i32_8 : i32
    %10 = arith.extui %9 : i1 to i32
    %c0_i32_9 = arith.constant 0 : i32
    %11 = arith.cmpi ne, %10, %c0_i32_9 : i32
    scf.if %11 {
      %c0_10 = arith.constant 0 : index
      %c0_11 = arith.constant 0 : index
      %12 = vector.load %arg6[%c0_10, %c0_11] : memref<16x128xf32, #tpu.memory_space<vmem>>, vector<16x128xf32>
      %c0_12 = arith.constant 0 : index
      %c0_13 = arith.constant 0 : index
      %13 = vector.load %arg5[%c0_12, %c0_13] : memref<16x128xf32, #tpu.memory_space<vmem>>, vector<16x128xf32>
      tpu.vector_store %arg5[%c0_12, %c0_13], %12 {strides = array<i32>} : memref<16x128xf32, #tpu.memory_space<vmem>>, vector<16x128xf32>,
    } else {
    }
    return
  }
  func.func @transform_0(%arg0: i32, %arg1: i32, %arg2: i32) -> (i32, i32) {
    %c0_i32 = arith.constant 0 : i32
    return %arg0, %arg2 : i32, i32
  }
  func.func @transform_1(%arg0: i32, %arg1: i32, %arg2: i32) -> (i32, i32) {
    %c0_i32 = arith.constant 0 : i32
    return %arg2, %arg1 : i32, i32
  }
  func.func @transform_2(%arg0: i32, %arg1: i32, %arg2: i32) -> (i32, i32) {
    %c0_i32 = arith.constant 0 : i32
    return %arg0, %arg1 : i32, i32
  }
}

module attributes {stable_mosaic.version = 11 : i64} {
  func.func @_matmul_kernel(%arg0: i32, %arg1: i32, %arg2: i32, %arg3: memref<32x256xbf16, #tpu.memory_space<vmem>>, %arg4: memref<256x128xbf16, #tpu.memory_space<vmem>>, %arg5: memref<32x128xf32, #tpu.memory_space<vmem>>, %arg6: memref<32x128xf32, #tpu.memory_space<vmem>>) attributes {dimension_semantics = [#tpu.dimension_semantics<parallel>, #tpu.dimension_semantics<parallel>, #tpu.dimension_semantics<arbitrary>], iteration_bounds = array<i64: 1, 1, 1>, scalar_prefetch = 0 : i64, scratch_operands = 1 : i64, tpu.core_type = #tpu.core_type<tc>, window_params = [{transform_indices = @transform_0, window_bounds = array<i64: 32, 256>}, {transform_indices = @transform_1, window_bounds = array<i64: 256, 128>}, {transform_indices = @transform_2, window_bounds = array<i64: 32, 128>}]} {
    %c0_i32 = arith.constant 0 : i32
    %0 = arith.cmpi eq, %arg2, %c0_i32 : i32
    %1 = arith.extui %0 : i1 to i32
    %c0_i32_0 = arith.constant 0 : i32
    %2 = arith.cmpi ne, %1, %c0_i32_0 : i32
    scf.if %2 {
      %cst_10 = arith.constant 0.000000e+00 : f32
      %12 = vector.broadcast %cst_10 : f32 to vector<32x128xf32>
      %c0_11 = arith.constant 0 : index
      %c0_12 = arith.constant 0 : index
      %13 = vector.load %arg6[%c0_11, %c0_12] : memref<32x128xf32, #tpu.memory_space<vmem>>, vector<32x128xf32>
      tpu.vector_store %arg6[%c0_11, %c0_12], %12 {strides = array<i32>} : memref<32x128xf32, #tpu.memory_space<vmem>>, vector<32x128xf32>,
    } else {
    }
    %c0 = arith.constant 0 : index
    %c0_1 = arith.constant 0 : index
    %3 = vector.load %arg6[%c0, %c0_1] : memref<32x128xf32, #tpu.memory_space<vmem>>, vector<32x128xf32>
    %c0_2 = arith.constant 0 : index
    %c0_3 = arith.constant 0 : index
    %4 = vector.load %arg3[%c0_2, %c0_3] : memref<32x256xbf16, #tpu.memory_space<vmem>>, vector<32x256xbf16>
    %c0_4 = arith.constant 0 : index
    %c0_5 = arith.constant 0 : index
    %5 = vector.load %arg4[%c0_4, %c0_5] : memref<256x128xbf16, #tpu.memory_space<vmem>>, vector<256x128xbf16>
    %cst = arith.constant dense<0.000000e+00> : vector<32x128xf32>
    %6 = tpu.matmul %4, %5, %cst {dimension_numbers = #tpu.dot_dimension_numbers<[1], [0], [0], [1], [0, 0, 1, 1], [], []>} : vector<32x256xbf16>, vector<256x128xbf16>, vector<32x128xf32> -> vector<32x128xf32>
    %7 = arith.addf %3, %6 : vector<32x128xf32>
    %c0_6 = arith.constant 0 : index
    %c0_7 = arith.constant 0 : index
    %8 = vector.load %arg6[%c0_6, %c0_7] : memref<32x128xf32, #tpu.memory_space<vmem>>, vector<32x128xf32>
    tpu.vector_store %arg6[%c0_6, %c0_7], %7 {strides = array<i32>} : memref<32x128xf32, #tpu.memory_space<vmem>>, vector<32x128xf32>,
    %c0_i32_8 = arith.constant 0 : i32
    %9 = arith.cmpi eq, %arg2, %c0_i32_8 : i32
    %10 = arith.extui %9 : i1 to i32
    %c0_i32_9 = arith.constant 0 : i32
    %11 = arith.cmpi ne, %10, %c0_i32_9 : i32
    scf.if %11 {
      %c0_10 = arith.constant 0 : index
      %c0_11 = arith.constant 0 : index
      %12 = vector.load %arg6[%c0_10, %c0_11] : memref<32x128xf32, #tpu.memory_space<vmem>>, vector<32x128xf32>
      %c0_12 = arith.constant 0 : index
      %c0_13 = arith.constant 0 : index
      %13 = vector.load %arg5[%c0_12, %c0_13] : memref<32x128xf32, #tpu.memory_space<vmem>>, vector<32x128xf32>
      tpu.vector_store %arg5[%c0_12, %c0_13], %12 {strides = array<i32>} : memref<32x128xf32, #tpu.memory_space<vmem>>, vector<32x128xf32>,
    } else {
    }
    return
  }
  func.func @transform_0(%arg0: i32, %arg1: i32, %arg2: i32) -> (i32, i32) {
    %c0_i32 = arith.constant 0 : i32
    return %arg0, %arg2 : i32, i32
  }
  func.func @transform_1(%arg0: i32, %arg1: i32, %arg2: i32) -> (i32, i32) {
    %c0_i32 = arith.constant 0 : i32
    return %arg2, %arg1 : i32, i32
  }
  func.func @transform_2(%arg0: i32, %arg1: i32, %arg2: i32) -> (i32, i32) {
    %c0_i32 = arith.constant 0 : i32
    return %arg0, %arg1 : i32, i32
  }
}

module attributes {stable_mosaic.version = 11 : i64} {
  func.func @_postproc_kernel(%arg0: i32, %arg1: i32, %arg2: memref<1x64x32xf32, #tpu.memory_space<vmem>>, %arg3: memref<1x64x32xf32, #tpu.memory_space<vmem>>) attributes {dimension_semantics = [#tpu.dimension_semantics<parallel>, #tpu.dimension_semantics<parallel>], iteration_bounds = array<i64: 2, 1>, scalar_prefetch = 0 : i64, scratch_operands = 0 : i64, tpu.core_type = #tpu.core_type<tc>, window_params = [{transform_indices = @transform_0, window_bounds = array<i64: 1, 64, 32>}, {transform_indices = @transform_1, window_bounds = array<i64: 1, 64, 32>}]} {
    %c0 = arith.constant 0 : index
    %c0_0 = arith.constant 0 : index
    %c0_1 = arith.constant 0 : index
    %0 = vector.load %arg2[%c0, %c0_0, %c0_1] : memref<1x64x32xf32, #tpu.memory_space<vmem>>, vector<1x64x32xf32>
    %cst = arith.constant dense<0.000000e+00> : vector<1x32xf32>
    %1 = vector.multi_reduction <add>, %0, %cst [1] : vector<1x64x32xf32> to vector<1x32xf32>
    %2 = vector.shape_cast %1 : vector<1x32xf32> to vector<1x1x32xf32>
    %cst_2 = arith.constant 6.400000e+01 : f32
    %3 = vector.broadcast %cst_2 : f32 to vector<1x1x32xf32>
    %4 = arith.divf %2, %3 : vector<1x1x32xf32>
    %5 = arith.mulf %0, %0 : vector<1x64x32xf32>
    %cst_3 = arith.constant dense<0.000000e+00> : vector<1x32xf32>
    %6 = vector.multi_reduction <add>, %5, %cst_3 [1] : vector<1x64x32xf32> to vector<1x32xf32>
    %7 = vector.shape_cast %6 : vector<1x32xf32> to vector<1x1x32xf32>
    %cst_4 = arith.constant 6.400000e+01 : f32
    %8 = vector.broadcast %cst_4 : f32 to vector<1x1x32xf32>
    %9 = arith.divf %7, %8 : vector<1x1x32xf32>
    %10 = arith.mulf %4, %4 : vector<1x1x32xf32>
    %11 = arith.subf %9, %10 : vector<1x1x32xf32>
    %cst_5 = arith.constant 0.000000e+00 : f32
    %12 = vector.broadcast %cst_5 : f32 to vector<1x1x32xf32>
    %13 = arith.maximumf %11, %12 : vector<1x1x32xf32>
    %14 = vector.broadcast %4 : vector<1x1x32xf32> to vector<1x64x32xf32>
    %15 = arith.subf %0, %14 : vector<1x64x32xf32>
    %cst_6 = arith.constant 9.99999974E-6 : f32
    %16 = vector.broadcast %cst_6 : f32 to vector<1x1x32xf32>
    %17 = arith.addf %13, %16 : vector<1x1x32xf32>
    %18 = math.rsqrt %17 : vector<1x1x32xf32>
    %19 = vector.broadcast %18 : vector<1x1x32xf32> to vector<1x64x32xf32>
    %20 = arith.mulf %15, %19 : vector<1x64x32xf32>
    %cst_7 = arith.constant 0.000000e+00 : f32
    %21 = vector.broadcast %cst_7 : f32 to vector<1x64x32xf32>
    %22 = arith.cmpf ogt, %20, %21 : vector<1x64x32xf32>
    %cst_8 = arith.constant 2.000000e-01 : f32
    %23 = vector.broadcast %cst_8 : f32 to vector<1x64x32xf32>
    %24 = arith.mulf %23, %20 : vector<1x64x32xf32>
    %25 = arith.select %22, %20, %24 : vector<1x64x32xi1>, vector<1x64x32xf32>
    %c0_9 = arith.constant 0 : index
    %c0_10 = arith.constant 0 : index
    %c0_11 = arith.constant 0 : index
    %26 = vector.load %arg3[%c0_9, %c0_10, %c0_11] : memref<1x64x32xf32, #tpu.memory_space<vmem>>, vector<1x64x32xf32>
    tpu.vector_store %arg3[%c0_9, %c0_10, %c0_11], %25 {strides = array<i32>} : memref<1x64x32xf32, #tpu.memory_space<vmem>>, vector<1x64x32xf32>,
    return
  }
  func.func @transform_0(%arg0: i32, %arg1: i32) -> (i32, i32, i32) {
    %c0_i32 = arith.constant 0 : i32
    %c0_i32_0 = arith.constant 0 : i32
    return %arg0, %c0_i32, %arg1 : i32, i32, i32
  }
  func.func @transform_1(%arg0: i32, %arg1: i32) -> (i32, i32, i32) {
    %c0_i32 = arith.constant 0 : i32
    %c0_i32_0 = arith.constant 0 : i32
    return %arg0, %c0_i32, %arg1 : i32, i32, i32
  }
}

module attributes {stable_mosaic.version = 11 : i64} {
  func.func @_matmul_kernel(%arg0: i32, %arg1: i32, %arg2: i32, %arg3: memref<128x128xbf16, #tpu.memory_space<vmem>>, %arg4: memref<128x128xbf16, #tpu.memory_space<vmem>>, %arg5: memref<128x128xf32, #tpu.memory_space<vmem>>, %arg6: memref<128x128xf32, #tpu.memory_space<vmem>>) attributes {dimension_semantics = [#tpu.dimension_semantics<parallel>, #tpu.dimension_semantics<parallel>, #tpu.dimension_semantics<arbitrary>], iteration_bounds = array<i64: 1, 1, 1>, scalar_prefetch = 0 : i64, scratch_operands = 1 : i64, tpu.core_type = #tpu.core_type<tc>, window_params = [{transform_indices = @transform_0, window_bounds = array<i64: 128, 128>}, {transform_indices = @transform_1, window_bounds = array<i64: 128, 128>}, {transform_indices = @transform_2, window_bounds = array<i64: 128, 128>}]} {
    %c0_i32 = arith.constant 0 : i32
    %0 = arith.cmpi eq, %arg2, %c0_i32 : i32
    %1 = arith.extui %0 : i1 to i32
    %c0_i32_0 = arith.constant 0 : i32
    %2 = arith.cmpi ne, %1, %c0_i32_0 : i32
    scf.if %2 {
      %cst_10 = arith.constant 0.000000e+00 : f32
      %12 = vector.broadcast %cst_10 : f32 to vector<128x128xf32>
      %c0_11 = arith.constant 0 : index
      %c0_12 = arith.constant 0 : index
      %13 = vector.load %arg6[%c0_11, %c0_12] : memref<128x128xf32, #tpu.memory_space<vmem>>, vector<128x128xf32>
      tpu.vector_store %arg6[%c0_11, %c0_12], %12 {strides = array<i32>} : memref<128x128xf32, #tpu.memory_space<vmem>>, vector<128x128xf32>,
    } else {
    }
    %c0 = arith.constant 0 : index
    %c0_1 = arith.constant 0 : index
    %3 = vector.load %arg6[%c0, %c0_1] : memref<128x128xf32, #tpu.memory_space<vmem>>, vector<128x128xf32>
    %c0_2 = arith.constant 0 : index
    %c0_3 = arith.constant 0 : index
    %4 = vector.load %arg3[%c0_2, %c0_3] : memref<128x128xbf16, #tpu.memory_space<vmem>>, vector<128x128xbf16>
    %c0_4 = arith.constant 0 : index
    %c0_5 = arith.constant 0 : index
    %5 = vector.load %arg4[%c0_4, %c0_5] : memref<128x128xbf16, #tpu.memory_space<vmem>>, vector<128x128xbf16>
    %cst = arith.constant dense<0.000000e+00> : vector<128x128xf32>
    %6 = tpu.matmul %4, %5, %cst {dimension_numbers = #tpu.dot_dimension_numbers<[1], [0], [0], [1], [0, 0, 1, 1], [], []>} : vector<128x128xbf16>, vector<128x128xbf16>, vector<128x128xf32> -> vector<128x128xf32>
    %7 = arith.addf %3, %6 : vector<128x128xf32>
    %c0_6 = arith.constant 0 : index
    %c0_7 = arith.constant 0 : index
    %8 = vector.load %arg6[%c0_6, %c0_7] : memref<128x128xf32, #tpu.memory_space<vmem>>, vector<128x128xf32>
    tpu.vector_store %arg6[%c0_6, %c0_7], %7 {strides = array<i32>} : memref<128x128xf32, #tpu.memory_space<vmem>>, vector<128x128xf32>,
    %c0_i32_8 = arith.constant 0 : i32
    %9 = arith.cmpi eq, %arg2, %c0_i32_8 : i32
    %10 = arith.extui %9 : i1 to i32
    %c0_i32_9 = arith.constant 0 : i32
    %11 = arith.cmpi ne, %10, %c0_i32_9 : i32
    scf.if %11 {
      %c0_10 = arith.constant 0 : index
      %c0_11 = arith.constant 0 : index
      %12 = vector.load %arg6[%c0_10, %c0_11] : memref<128x128xf32, #tpu.memory_space<vmem>>, vector<128x128xf32>
      %13 = math.tanh %12 : vector<128x128xf32>
      %c0_12 = arith.constant 0 : index
      %c0_13 = arith.constant 0 : index
      %14 = vector.load %arg5[%c0_12, %c0_13] : memref<128x128xf32, #tpu.memory_space<vmem>>, vector<128x128xf32>
      tpu.vector_store %arg5[%c0_12, %c0_13], %13 {strides = array<i32>} : memref<128x128xf32, #tpu.memory_space<vmem>>, vector<128x128xf32>,
    } else {
    }
    return
  }
  func.func @transform_0(%arg0: i32, %arg1: i32, %arg2: i32) -> (i32, i32) {
    %c0_i32 = arith.constant 0 : i32
    return %arg0, %arg2 : i32, i32
  }
  func.func @transform_1(%arg0: i32, %arg1: i32, %arg2: i32) -> (i32, i32) {
    %c0_i32 = arith.constant 0 : i32
    return %arg2, %arg1 : i32, i32
  }
  func.func @transform_2(%arg0: i32, %arg1: i32, %arg2: i32) -> (i32, i32) {
    %c0_i32 = arith.constant 0 : i32
    return %arg0, %arg1 : i32, i32
  }
}

</mosaic_0001>

<bundles_post_ra>
// kernel: cycle_generator_forward.27
= control target key start
LH: loop header
LB: loop body
LE: loop exit
PB: predicated region body
PF: predicated region fallthrough
CT: control target
= control target key end

     0   :  { %s599_s1 = inlined_call_operand.vmem [shape: bf16[128,128], index: 1, kind: input, shape index: {}]   ;;  %s600_s0 = inlined_call_operand.vmem [shape: bf16[128,128], index: 0, kind: input, shape index: {}]   ;;  %s601_s2 = inlined_call_operand.vmem [shape: f32[128,128], index: 2, kind: output, shape index: {}]  }
   0x1   :  { %v472_v0 = vld [vmem:[%s599_s1 + $0x38] sm:$0xff]   ;;  %v473_v1 = vld [vmem:[%s599_s1 + $0x30] sm:$0xff]   ;;  %v474_v2 = vld [vmem:[%s599_s1 + $0x28] sm:$0xff]  }
   0x2   :  { %424 = vmatprep.subr.bf16.mxu0 %v472_v0  ;;  %456 = vmatprep.subr.bf16.mxu1 %v472_v0  ;;  %v475_v3 = vld [vmem:[%s599_s1 + $0x20] sm:$0xff]   ;;  %v476_v6 = vld [vmem:[%s599_s1 + $0x18] sm:$0xff]   ;;  %v477_v7 = vld [vmem:[%s599_s1 + $0x10] sm:$0xff]  }
   0x3   :  { %425 = vmatpush3.bf16.msra.mxu0 %v472_v0  ;;  %464 = vmatpush3.bf16.msra.mxu1 %v472_v0  ;;  %v480_v4 = vld [vmem:[%s600_s0] sm:$0xff]   ;;  %v478_v8 = vld [vmem:[%s599_s1 + $0x8] sm:$0xff]   ;;  %v484_v12 = vld [vmem:[%s600_s0 + $0x10] sm:$0xff]  }
   0x4   :  { %426 = vmatprep.subr.bf16.mxu0 %v473_v1  ;;  %457 = vmatprep.subr.bf16.mxu1 %v473_v1  ;;  %v481_v5 = vld [vmem:[%s600_s0 + $0x20] sm:$0xff]   ;;  %v482_v10 = vld [vmem:[%s600_s0 + $0x8] sm:$0xff]   ;;  %v485_v13 = vld [vmem:[%s600_s0 + $0x30] sm:$0xff]  }
   0x5   :  { %440 = vmatprep.mubr.bf16.mxu0 %v480_v4  ;;  %448 = vmatprep.mubr.bf16.mxu1 %v481_v5  ;;  %v479_v9 = vld [vmem:[%s599_s1] sm:$0xff]   ;;  %v483_v11 = vld [vmem:[%s600_s0 + $0x28] sm:$0xff]   ;;  %v486_v14 = vld [vmem:[%s600_s0 + $0x18] sm:$0xff]  }
   0x6   :  { %v487_v15 = vld [vmem:[%s600_s0 + $0x38] sm:$0xff]  }
   0x7   :  { %427 = vmatpush3.bf16.msra.mxu0 %v473_v1  ;;  %465 = vmatpush3.bf16.msra.mxu1 %v473_v1 }
   0x8   :  { %428 = vmatprep.subr.bf16.mxu0 %v474_v2  ;;  %458 = vmatprep.subr.bf16.mxu1 %v474_v2 }
   0xb   :  { %429 = vmatpush3.bf16.msra.mxu0 %v474_v2  ;;  %466 = vmatpush3.bf16.msra.mxu1 %v474_v2 }
   0xc   :  { %430 = vmatprep.subr.bf16.mxu0 %v475_v3  ;;  %459 = vmatprep.subr.bf16.mxu1 %v475_v3 }
   0xf   :  { %431 = vmatpush3.bf16.msra.mxu0 %v475_v3  ;;  %467 = vmatpush3.bf16.msra.mxu1 %v475_v3 }
  0x10   :  { %432 = vmatprep.subr.bf16.mxu0 %v476_v6  ;;  %460 = vmatprep.subr.bf16.mxu1 %v476_v6 }
  0x13   :  { %433 = vmatpush3.bf16.msra.mxu0 %v476_v6  ;;  %468 = vmatpush3.bf16.msra.mxu1 %v476_v6 }
  0x14   :  { %434 = vmatprep.subr.bf16.mxu0 %v477_v7  ;;  %461 = vmatprep.subr.bf16.mxu1 %v477_v7 }
  0x17   :  { %435 = vmatpush3.bf16.msra.mxu0 %v477_v7  ;;  %469 = vmatpush3.bf16.msra.mxu1 %v477_v7 }
  0x18   :  { %436 = vmatprep.subr.bf16.mxu0 %v478_v8  ;;  %462 = vmatprep.subr.bf16.mxu1 %v478_v8 }
  0x1b   :  { %437 = vmatpush3.bf16.msra.mxu0 %v478_v8  ;;  %470 = vmatpush3.bf16.msra.mxu1 %v478_v8 }
  0x1c   :  { %438 = vmatprep.subr.bf16.mxu0 %v479_v9  ;;  %463 = vmatprep.subr.bf16.mxu1 %v479_v9 }
  0x1f   :  { %439 = vmatpush3.bf16.msra.mxu0 %v479_v9  ;;  %471 = vmatpush3.bf16.msra.mxu1 %v479_v9 }
  0x22   :  { %441 = vmatmul.mubr.bf16.vlgmr.msra.gmra.mxu0 %v482_v10  ;;  %449 = vmatmul.mubr.bf16.vlgmr.msra.gmra.mxu1 %v483_v11 }
  0x23   :  { %444 = vmatprep.mubr.bf16.mxu0 %v484_v12  ;;  %452 = vmatprep.mubr.bf16.mxu1 %v485_v13 }
  0x2a   :  { %445 = vmatmul.mubr.bf16.gmra.mxu0 %v486_v14  ;;  %453 = vmatmul.mubr.bf16.gmra.mxu1 %v487_v15 }
  0xe2   :  { %v442_v16 = vpop.f32.mrf.mxu0  ;;  %v450_v17 = vpop.f32.mrf.mxu1 }
  0xe3   :  { %vm326_vm0 = vcmp.gt.f32.partialorder %v442_v16, 0.0  ;;  %v342_v18 = vmul.f32 0.2, %v442_v16  ;;  %vm334_vm1 = vcmp.gt.f32.partialorder %v450_v17, 0.0  ;;  %v350_v19 = vmul.f32 0.2, %v450_v17 }
  0xe4   :  { %v210_v20 = vpop.f32.mrf.mxu0  ;;  %v242_v21 = vpop.f32.mrf.mxu1 }
  0xe5   :  { %v358_v22 = vsel %vm326_vm0, %v442_v16, %v342_v18  ;;  %v366_v23 = vsel %vm334_vm1, %v450_v17, %v350_v19  ;;  %vm324_vm2 = vcmp.gt.f32.partialorder %v210_v20, 0.0  ;;  %v340_v24 = vmul.f32 0.2, %v210_v20 }
  0xe6   :  { %374 = vst [vmem:[%s601_s2 + $0x10] sm:$0xff] %v358_v22  ;;  %382 = vst [vmem:[%s601_s2 + $0x50] sm:$0xff] %v366_v23  ;;  %vm332_vm3 = vcmp.gt.f32.partialorder %v242_v21, 0.0  ;;  %v348_v25 = vmul.f32 0.2, %v242_v21  ;;  %v443_v26 = vpop.f32.mrf.mxu0  ;;  %v451_v27 = vpop.f32.mrf.mxu1 }
  0xe7   :  { %v356_v28 = vsel %vm324_vm2, %v210_v20, %v340_v24  ;;  %vm327_vm4 = vcmp.gt.f32.partialorder %v443_v26, 0.0  ;;  %v343_v29 = vmul.f32 0.2, %v443_v26  ;;  %vm335_vm5 = vcmp.gt.f32.partialorder %v451_v27, 0.0 }
  0xe8   :  { %372 = vst [vmem:[%s601_s2] sm:$0xff] %v356_v28  ;;  %v364_v30 = vsel %vm332_vm3, %v242_v21, %v348_v25  ;;  %v351_v31 = vmul.f32 0.2, %v451_v27  ;;  %v213_v32 = vpop.f32.mrf.mxu0  ;;  %v245_v33 = vpop.f32.mrf.mxu1 }
  0xe9   :  { %380 = vst [vmem:[%s601_s2 + $0x40] sm:$0xff] %v364_v30  ;;  %v359_v34 = vsel %vm327_vm4, %v443_v26, %v343_v29  ;;  %vm325_vm6 = vcmp.gt.f32.partialorder %v213_v32, 0.0  ;;  %v341_v35 = vmul.f32 0.2, %v213_v32  ;;  %vm333_vm7 = vcmp.gt.f32.partialorder %v245_v33, 0.0 }
  0xea   :  { %375 = vst [vmem:[%s601_s2 + $0x18] sm:$0xff] %v359_v34  ;;  %v367_v36 = vsel %vm335_vm5, %v451_v27, %v351_v31  ;;  %v349_v37 = vmul.f32 0.2, %v245_v33  ;;  %v446_v38 = vpop.f32.mrf.mxu0  ;;  %v454_v39 = vpop.f32.mrf.mxu1 }
  0xeb   :  { %383 = vst [vmem:[%s601_s2 + $0x58] sm:$0xff] %v367_v36  ;;  %v357_v40 = vsel %vm325_vm6, %v213_v32, %v341_v35  ;;  %vm330_vm8 = vcmp.gt.f32.partialorder %v446_v38, 0.0  ;;  %v346_v41 = vmul.f32 0.2, %v446_v38  ;;  %vm338_vm9 = vcmp.gt.f32.partialorder %v454_v39, 0.0 }
  0xec   :  { %373 = vst [vmem:[%s601_s2 + $0x8] sm:$0xff] %v357_v40  ;;  %v365_v42 = vsel %vm333_vm7, %v245_v33, %v349_v37  ;;  %v354_v43 = vmul.f32 0.2, %v454_v39  ;;  %v226_v44 = vpop.f32.mrf.mxu0  ;;  %v258_v45 = vpop.f32.mrf.mxu1 }
  0xed   :  { %381 = vst [vmem:[%s601_s2 + $0x48] sm:$0xff] %v365_v42  ;;  %v362_v46 = vsel %vm330_vm8, %v446_v38, %v346_v41  ;;  %vm328_vm10 = vcmp.gt.f32.partialorder %v226_v44, 0.0  ;;  %v344_v47 = vmul.f32 0.2, %v226_v44  ;;  %vm336_vm11 = vcmp.gt.f32.partialorder %v258_v45, 0.0 }
  0xee   :  { %378 = vst [vmem:[%s601_s2 + $0x30] sm:$0xff] %v362_v46  ;;  %v370_v48 = vsel %vm338_vm9, %v454_v39, %v354_v43  ;;  %v352_v49 = vmul.f32 0.2, %v258_v45  ;;  %v447_v50 = vpop.f32.mrf.mxu0  ;;  %v455_v51 = vpop.f32.mrf.mxu1 }
  0xef   :  { %386 = vst [vmem:[%s601_s2 + $0x70] sm:$0xff] %v370_v48  ;;  %v360_v52 = vsel %vm328_vm10, %v226_v44, %v344_v47  ;;  %vm331_vm12 = vcmp.gt.f32.partialorder %v447_v50, 0.0  ;;  %v347_v53 = vmul.f32 0.2, %v447_v50  ;;  %vm339_vm13 = vcmp.gt.f32.partialorder %v455_v51, 0.0 }
  0xf0   :  { %376 = vst [vmem:[%s601_s2 + $0x20] sm:$0xff] %v360_v52  ;;  %v368_v54 = vsel %vm336_vm11, %v258_v45, %v352_v49  ;;  %v355_v55 = vmul.f32 0.2, %v455_v51  ;;  %v229_v56 = vpop.f32.mrf.mxu0  ;;  %v261_v57 = vpop.f32.mrf.mxu1 }
  0xf1   :  { %384 = vst [vmem:[%s601_s2 + $0x60] sm:$0xff] %v368_v54  ;;  %v363_v58 = vsel %vm331_vm12, %v447_v50, %v347_v53  ;;  %vm329_vm14 = vcmp.gt.f32.partialorder %v229_v56, 0.0  ;;  %v345_v59 = vmul.f32 0.2, %v229_v56  ;;  %vm337_vm15 = vcmp.gt.f32.partialorder %v261_v57, 0.0 }
  0xf2   :  { %379 = vst [vmem:[%s601_s2 + $0x38] sm:$0xff] %v363_v58  ;;  %v371_v60 = vsel %vm339_vm13, %v455_v51, %v355_v55  ;;  %v353_v61 = vmul.f32 0.2, %v261_v57 }
  0xf3   :  { %387 = vst [vmem:[%s601_s2 + $0x78] sm:$0xff] %v371_v60  ;;  %v361_v62 = vsel %vm329_vm14, %v229_v56, %v345_v59 }
  0xf4   :  { %377 = vst [vmem:[%s601_s2 + $0x28] sm:$0xff] %v361_v62  ;;  %v369_v63 = vsel %vm337_vm15, %v261_v57, %v353_v61 }
  0xf5   :  { %385 = vst [vmem:[%s601_s2 + $0x68] sm:$0xff] %v369_v63 }

// kernel: cycle_generator_forward.29
= control target key start
LH: loop header
LB: loop body
LE: loop exit
PB: predicated region body
PF: predicated region fallthrough
CT: control target
= control target key end

     0   :  { %s347_s6 = smov 0   ;;  %s349_s7 = smov 0   ;;  %s393_s0 = inlined_call_operand.vmem [shape: f32[2,16,64], index: 0, kind: input, shape index: {}]   ;;  %s394_s1 = inlined_call_operand.vmem [shape: f32[2,16,64], index: 1, kind: output, shape index: {}]  }
   0x1   :  { %s351_s8 = smov 0  }
   0x2 LB: > { %s23_s9 = sadd.s32 1, %s331_s7  ;;  %p278_p0 = scmp.ge.s32.totalorder %s335_s8, 1  ;;  %s335_s8 = sphi %s351_s8, %s11_s8   ;;  %s331_s7 = sphi %s349_s7, %s396_s7   ;;  %s327_s6 = sphi %s347_s6, %s395_s6  }
   0x3   : > { %p25_p1 = scmp.ge.s32.totalorder %s23_s9, 2  ;;  %p106_p2 = scmp.lt.s32.totalorder %s335_s8, 3 }
   0x5   : > { %s398_s9 = smov (%p25_p1, %s23_s9), 0  ;;  %p107_p3 = pnand %p278_p0, %p106_p2 }
   0x6   : > { %p132_p4 = scmp.lt.s32.totalorder (!%p107_p3), %s327_s6, 1 }
   0x7   : > { %110 = sbr.rel (%p107_p3) target bundleno = 61 (0x3d), region = 24 }
   0xc   : > { %s400_s6 = smov (!%p132_p4, %s327_s6), 1  ;;  %vm150_vm0 = vcmask 523264  }
   0xd   : > { %s285_s10 = sshll.u32 %s400_s6, 4 }
   0xe   : > { %s139_s13 = scalar_lea.vmem %s393_s0, %s285_s10  ;;  %s147_s16 = scalar_lea.vmem %s394_s1, %s285_s10 }
   0xf   : > { %v148_v0 = vld [vmem:[%s139_s13] sm:$0xff]  ;;  %v149_v1 = vld [vmem:[%s139_s13 + $0x8] sm:$0xff] }
  0x10   : > { %v151_v2 = vsel %vm150_vm0, %v148_v0, 0.0  ;;  %v152_v3 = vsel %vm150_vm0, %v149_v1, 0.0  ;;  %v162_v4 = vmul.f32 %v148_v0, %v148_v0  ;;  %v163_v5 = vmul.f32 %v149_v1, %v149_v1 }
  0x11   : > { %v153_v6 = vadd.f32 %v152_v3, %v151_v2 }
  0x12   : > { %v164_v7 = vsel %vm150_vm0, %v162_v4, 0.0  ;;  %v165_v8 = vsel %vm150_vm0, %v163_v5, 0.0 }
  0x13   : > { %v154_v9 = vrot.slane %v153_v6, 4  ;;  %v166_v10 = vadd.f32 %v165_v8, %v164_v7 }
  0x15   : > { %v155_v11 = vadd.f32 %v154_v9, %v153_v6  ;;  %v167_v12 = vrot.slane %v166_v10, 4 }
  0x17   : > { %v156_v13 = vrot.slane %v155_v11, 2  ;;  %v168_v14 = vadd.f32 %v167_v12, %v166_v10 }
  0x19   : > { %v157_v15 = vadd.f32 %v156_v13, %v155_v11  ;;  %v169_v16 = vrot.slane %v168_v14, 2 }
  0x1b   : > { %v158_v17 = vrot.slane %v157_v15, 1  ;;  %v170_v18 = vadd.f32 %v169_v16, %v168_v14 }
  0x1d   : > { %v159_v19 = vadd.f32 %v158_v17, %v157_v15  ;;  %v171_v20 = vrot.slane %v170_v18, 1 }
  0x1f   : > { %v161_v21 = vmul.f32 0.0625, %v159_v19  ;;  %v172_v22 = vadd.f32 %v171_v20, %v170_v18 }
  0x21   : > { %v173_v23 = vmul.f32 0.0625, %v172_v22  ;;  %v174_v24 = vmul.f32 %v161_v21, %v161_v21  ;;  %v177_v28 = vsub.f32 %v148_v0, %v161_v21  ;;  %v178_v29 = vsub.f32 %v149_v1, %v161_v21 }
  0x23   : > { %v175_v25 = vsub.f32 %v173_v23, %v174_v24 }
  0x25   : > { %v176_v26 = vmax.f32 %v175_v25, 0.0 }
  0x27   : > { %v179_v27 = vadd.f32 1e-05, %v176_v26 }
  0x29   : > { %311 = vrsqrt.f32 %v179_v27 }
  0x36   : > { %v312_v30 = vpop.eup %311 }
  0x37   : > { %v181_v31 = vmul.f32 %v312_v30, %v177_v28  ;;  %v182_v32 = vmul.f32 %v312_v30, %v178_v29 }
  0x39   : > { %vm183_vm1 = vcmp.gt.f32.partialorder %v181_v31, 0.0  ;;  %v185_v33 = vmul.f32 0.2, %v181_v31  ;;  %vm184_vm2 = vcmp.gt.f32.partialorder %v182_v32, 0.0  ;;  %v186_v34 = vmul.f32 0.2, %v182_v32 }
  0x3b   : > { %v187_v35 = vsel %vm183_vm1, %v181_v31, %v185_v33  ;;  %v188_v36 = vsel %vm184_vm2, %v182_v32, %v186_v34 }
  0x3c   : > { %189 = vst.msk [vmem:[%s147_s16] sm:$0xff] %vm150_vm0, %v187_v35  ;;  %190 = vst.msk [vmem:[%s147_s16 + $0x8] sm:$0xff] %vm150_vm0, %v188_v36 }
  0x3d PF: > { %s11_s8 = sadd.s32 1, %s335_s8   ;;  %s395_s6 = smov %s331_s7 }
  0x3e   : > { %p8_p5 = scmp.ge.s32.totalorder %s11_s8, 4   ;;  %s396_s7 = smov %s398_s9 }
  0x40   :  { %10 = sbr.rel (!%p8_p5) target bundleno = 2 (0x2), region = 54 }

// kernel: cycle_generator_forward.28
= control target key start
LH: loop header
LB: loop body
LE: loop exit
PB: predicated region body
PF: predicated region fallthrough
CT: control target
= control target key end

     0   :  { %s736_s1 = inlined_call_operand.vmem [shape: bf16[512,128], index: 1, kind: input, shape index: {}]   ;;  %s737_s0 = inlined_call_operand.vmem [shape: bf16[32,512], index: 0, kind: input, shape index: {}]   ;;  %s738_s2 = inlined_call_operand.vmem [shape: f32[32,128], index: 2, kind: output, shape index: {}]  }
   0x1   :  { %v545_v0 = vld [vmem:[%s736_s1 + $0x78] sm:$0xff]   ;;  %v549_v4 = vld [vmem:[%s736_s1 + $0x70] sm:$0xff]   ;;  %v553_v8 = vld [vmem:[%s736_s1 + $0x68] sm:$0xff]  }
   0x2   :  { %v546_v1 = vld [vmem:[%s736_s1 + $0xf8] sm:$0xff]   ;;  %489 = vmatprep.subr.bf16.mxu0 %v545_v0  ;;  %v550_v5 = vld [vmem:[%s736_s1 + $0xf0] sm:$0xff]   ;;  %v554_v9 = vld [vmem:[%s736_s1 + $0xe8] sm:$0xff]  }
   0x3   :  { %v547_v2 = vld [vmem:[%s736_s1 + $0x38] sm:$0xff]   ;;  %517 = vmatprep.subr.bf16.mxu1 %v546_v1  ;;  %v551_v6 = vld [vmem:[%s736_s1 + $0x30] sm:$0xff]   ;;  %v555_v10 = vld [vmem:[%s736_s1 + $0x28] sm:$0xff]  }
   0x4   :  { %v548_v3 = vld [vmem:[%s736_s1 + $0xb8] sm:$0xff]   ;;  %490 = vmatpush3.bf16.msra.mxu0 %v547_v2  ;;  %v552_v7 = vld [vmem:[%s736_s1 + $0xb0] sm:$0xff]   ;;  %v556_v11 = vld [vmem:[%s736_s1 + $0xa8] sm:$0xff]  }
   0x5   :  { %518 = vmatpush3.bf16.msra.mxu1 %v548_v3  ;;  %491 = vmatprep.subr.bf16.mxu0 %v549_v4  ;;  %v557_v12 = vld [vmem:[%s736_s1 + $0x60] sm:$0xff]   ;;  %v561_v16 = vld [vmem:[%s736_s1 + $0x58] sm:$0xff]   ;;  %v565_v20 = vld [vmem:[%s736_s1 + $0x50] sm:$0xff]  }
   0x6   :  { %519 = vmatprep.subr.bf16.mxu1 %v550_v5  ;;  %v558_v13 = vld [vmem:[%s736_s1 + $0xe0] sm:$0xff]   ;;  %v562_v17 = vld [vmem:[%s736_s1 + $0xd8] sm:$0xff]   ;;  %v566_v21 = vld [vmem:[%s736_s1 + $0xd0] sm:$0xff]  }
   0x7   :  { %v559_v14 = vld [vmem:[%s736_s1 + $0x20] sm:$0xff]   ;;  %v563_v18 = vld [vmem:[%s736_s1 + $0x18] sm:$0xff]   ;;  %v567_v22 = vld [vmem:[%s736_s1 + $0x10] sm:$0xff]  }
   0x8   :  { %492 = vmatpush3.bf16.msra.mxu0 %v551_v6  ;;  %v560_v15 = vld [vmem:[%s736_s1 + $0xa0] sm:$0xff]   ;;  %v564_v19 = vld [vmem:[%s736_s1 + $0x98] sm:$0xff]   ;;  %v568_v23 = vld [vmem:[%s736_s1 + $0x90] sm:$0xff]  }
   0x9   :  { %520 = vmatpush3.bf16.msra.mxu1 %v552_v7  ;;  %493 = vmatprep.subr.bf16.mxu0 %v553_v8  ;;  %v569_v24 = vld [vmem:[%s736_s1 + $0x48] sm:$0xff]   ;;  %v573_v28 = vld [vmem:[%s736_s1 + $0x40] sm:$0xff]  }
   0xa   :  { %521 = vmatprep.subr.bf16.mxu1 %v554_v9  ;;  %v570_v25 = vld [vmem:[%s736_s1 + $0xc8] sm:$0xff]   ;;  %v574_v29 = vld [vmem:[%s736_s1 + $0xc0] sm:$0xff]  }
   0xb   :  { %v571_v26 = vld [vmem:[%s736_s1 + $0x8] sm:$0xff]   ;;  %v575_v30 = vld [vmem:[%s736_s1] sm:$0xff]  }
   0xc   :  { %494 = vmatpush3.bf16.msra.mxu0 %v555_v10  ;;  %v572_v27 = vld [vmem:[%s736_s1 + $0x88] sm:$0xff]   ;;  %v576_v31 = vld [vmem:[%s736_s1 + $0x80] sm:$0xff]  }
   0xd   :  { %522 = vmatpush3.bf16.msra.mxu1 %v556_v11  ;;  %495 = vmatprep.subr.bf16.mxu0 %v557_v12  ;;  %v577_v32 = vld [vmem:[%s737_s0] ss:$16 sps:$4 sm:$0xff]   ;;  %v579_v33 = vld [vmem:[%s737_s0 + $0x4] ss:$16 sps:$4 sm:$0xff]   ;;  %v580_v34 = vld [vmem:[%s737_s0 + $0x8] ss:$16 sps:$4 sm:$0xff]  }
   0xe   :  { %523 = vmatprep.subr.bf16.mxu1 %v558_v13  ;;  %v582_v35 = vld [vmem:[%s737_s0 + $0xc] ss:$16 sps:$4 sm:$0xff]   ;;  %360 = vmatprep.mubr.bf16.mxu0 %v579_v33  ;;  %v583_v36 = vld [vmem:[%s737_s0 + $0x24] ss:$16 sps:$4 sm:$0xff]   ;;  %v587_v38 = vld [vmem:[%s737_s0 + $0x20] ss:$16 sps:$4 sm:$0xff]  }
   0xf   :  { %409 = vmatprep.mubr.bf16.mxu1 %v582_v35  ;;  %v585_v37 = vld [vmem:[%s737_s0 + $0x2c] ss:$16 sps:$4 sm:$0xff]   ;;  %v588_v39 = vld [vmem:[%s737_s0 + $0x28] ss:$16 sps:$4 sm:$0xff]  }
  0x10   :  { %496 = vmatpush3.bf16.msra.mxu0 %v559_v14 }
  0x11   :  { %524 = vmatpush3.bf16.msra.mxu1 %v560_v15  ;;  %497 = vmatprep.subr.bf16.mxu0 %v561_v16 }
  0x12   :  { %525 = vmatprep.subr.bf16.mxu1 %v562_v17 }
  0x14   :  { %498 = vmatpush3.bf16.msra.mxu0 %v563_v18 }
  0x15   :  { %526 = vmatpush3.bf16.msra.mxu1 %v564_v19  ;;  %499 = vmatprep.subr.bf16.mxu0 %v565_v20 }
  0x16   :  { %527 = vmatprep.subr.bf16.mxu1 %v566_v21 }
  0x18   :  { %500 = vmatpush3.bf16.msra.mxu0 %v567_v22 }
  0x19   :  { %528 = vmatpush3.bf16.msra.mxu1 %v568_v23  ;;  %501 = vmatprep.subr.bf16.mxu0 %v569_v24 }
  0x1a   :  { %529 = vmatprep.subr.bf16.mxu1 %v570_v25 }
  0x1c   :  { %502 = vmatpush3.bf16.msra.mxu0 %v571_v26 }
  0x1d   :  { %530 = vmatpush3.bf16.msra.mxu1 %v572_v27  ;;  %503 = vmatprep.subr.bf16.mxu0 %v573_v28 }
  0x1e   :  { %531 = vmatprep.subr.bf16.mxu1 %v574_v29 }
  0x20   :  { %504 = vmatpush3.bf16.msra.mxu0 %v575_v30 }
  0x21   :  { %532 = vmatpush3.bf16.msra.mxu1 %v576_v31 }
  0x23   :  { %361 = vmatmul.mubr.bf16.vlgmr.msra.gmra.mxu0 %v577_v32 }
  0x24   :  { %410 = vmatmul.mubr.bf16.vlgmr.msra.gmra.mxu1 %v580_v34  ;;  %368 = vmatprep.mubr.bf16.mxu0 %v583_v36 }
  0x25   :  { %417 = vmatprep.mubr.bf16.mxu1 %v585_v37 }
  0x2b   :  { %369 = vmatmul.mubr.bf16.gmra.mxu0 %v587_v38 }
  0x2c   :  { %418 = vmatmul.mubr.bf16.gmra.mxu1 %v588_v39 }
  0xe3   :  { %v505_v40 = vpop.f32.mrf.mxu0 }
  0xe4   :  { %v533_v41 = vpop.f32.mrf.mxu1 }
  0xe5   :  { %v506_v42 = vpop.f32.mrf.mxu0 }
  0xe6   :  { %v507_v43 = vadd.f32 %v506_v42, %v505_v40  ;;  %v534_v44 = vpop.f32.mrf.mxu1 }
  0xe7   :  { %v535_v45 = vadd.f32 %v534_v44, %v533_v41  ;;  %v508_v46 = vpop.f32.mrf.mxu0 }
  0xe8   :  { %v536_v47 = vpop.f32.mrf.mxu1 }
  0xe9   :  { %v412_v48 = vadd.f32 %v535_v45, %v507_v43  ;;  %v509_v49 = vpop.f32.mrf.mxu0 }
  0xea   :  { %v510_v50 = vadd.f32 %v509_v49, %v508_v46  ;;  %v537_v51 = vpop.f32.mrf.mxu1 }
  0xeb   :  { %441 = vst [vmem:[%s738_s2] sm:$0xff] %v412_v48  ;;  %v538_v52 = vadd.f32 %v537_v51, %v536_v47  ;;  %v511_v53 = vpop.f32.mrf.mxu0 }
  0xec   :  { %v539_v54 = vpop.f32.mrf.mxu1 }
  0xed   :  { %v415_v55 = vadd.f32 %v538_v52, %v510_v50  ;;  %v512_v56 = vpop.f32.mrf.mxu0 }
  0xee   :  { %v513_v57 = vadd.f32 %v512_v56, %v511_v53  ;;  %v540_v58 = vpop.f32.mrf.mxu1 }
  0xef   :  { %442 = vst [vmem:[%s738_s2 + $0x8] sm:$0xff] %v415_v55  ;;  %v541_v59 = vadd.f32 %v540_v58, %v539_v54  ;;  %v514_v60 = vpop.f32.mrf.mxu0 }
  0xf0   :  { %v542_v61 = vpop.f32.mrf.mxu1 }
  0xf1   :  { %v420_v62 = vadd.f32 %v541_v59, %v513_v57  ;;  %v515_v63 = vpop.f32.mrf.mxu0 }
  0xf2   :  { %v516_v0 = vadd.f32 %v515_v63, %v514_v60  ;;  %v543_v1 = vpop.f32.mrf.mxu1 }
  0xf3   :  { %443 = vst [vmem:[%s738_s2 + $0x10] sm:$0xff] %v420_v62  ;;  %v544_v2 = vadd.f32 %v543_v1, %v542_v61 }
  0xf5   :  { %v423_v3 = vadd.f32 %v544_v2, %v516_v0 }
  0xf7   :  { %444 = vst [vmem:[%s738_s2 + $0x18] sm:$0xff] %v423_v3 }

// kernel: cycle_generator_forward.31
= control target key start
LH: loop header
LB: loop body
LE: loop exit
PB: predicated region body
PF: predicated region fallthrough
CT: control target
= control target key end

     0   :  { %s317_s6 = smov 0   ;;  %s319_s7 = smov 0   ;;  %s357_s0 = inlined_call_operand.vmem [shape: f32[2,4,128], index: 0, kind: input, shape index: {}]   ;;  %s358_s1 = inlined_call_operand.vmem [shape: f32[2,4,128], index: 1, kind: output, shape index: {}]  }
   0x1   :  { %s321_s8 = smov 0  }
   0x2 LB: > { %s23_s9 = sadd.s32 1, %s301_s7  ;;  %p252_p0 = scmp.ge.s32.totalorder %s305_s8, 1  ;;  %s305_s8 = sphi %s321_s8, %s11_s8   ;;  %s301_s7 = sphi %s319_s7, %s360_s7   ;;  %s297_s6 = sphi %s317_s6, %s359_s6  }
   0x3   : > { %p25_p1 = scmp.ge.s32.totalorder %s23_s9, 2  ;;  %p105_p2 = scmp.lt.s32.totalorder %s305_s8, 3 }
   0x5   : > { %s362_s9 = smov (%p25_p1, %s23_s9), 0  ;;  %p106_p3 = pnand %p252_p0, %p105_p2 }
   0x6   : > { %p129_p4 = scmp.lt.s32.totalorder (!%p106_p3), %s297_s6, 1 }
   0x7   : > { %109 = sbr.rel (%p106_p3) target bundleno = 59 (0x3b), region = 24 }
   0xc   : > { %s364_s6 = smov (!%p129_p4, %s297_s6), 1  ;;  %vm144_vm0 = vcmask 1043456  }
   0xd   : > { %s253_s10 = sshll.u32 %s364_s6, 2 }
   0xe   : > { %s135_s13 = scalar_lea.vmem %s357_s0, %s253_s10  ;;  %s142_s16 = scalar_lea.vmem %s358_s1, %s253_s10 }
   0xf   : > { %v143_v0 = vld [vmem:[%s135_s13] sm:$0xf] }
  0x10   : > { %v145_v1 = vsel %vm144_vm0, %v143_v0, 0.0  ;;  %v154_v2 = vmul.f32 %v143_v0, %v143_v0 }
  0x11   : > { %v146_v3 = vrot.slane %v145_v1, 4 }
  0x12   : > { %v155_v4 = vsel %vm144_vm0, %v154_v2, 0.0 }
  0x13   : > { %v147_v5 = vadd.f32 %v146_v3, %v145_v1  ;;  %v156_v6 = vrot.slane %v155_v4, 4 }
  0x15   : > { %v148_v7 = vrot.slane %v147_v5, 2  ;;  %v157_v8 = vadd.f32 %v156_v6, %v155_v4 }
  0x17   : > { %v149_v9 = vadd.f32 %v148_v7, %v147_v5  ;;  %v158_v10 = vrot.slane %v157_v8, 2 }
  0x19   : > { %v150_v11 = vrot.slane %v149_v9, 1  ;;  %v159_v12 = vadd.f32 %v158_v10, %v157_v8 }
  0x1b   : > { %v151_v13 = vadd.f32 %v150_v11, %v149_v9  ;;  %v160_v14 = vrot.slane %v159_v12, 1 }
  0x1d   : > { %v153_v15 = vmul.f32 0.25, %v151_v13  ;;  %v161_v16 = vadd.f32 %v160_v14, %v159_v12 }
  0x1f   : > { %v162_v17 = vmul.f32 0.25, %v161_v16  ;;  %v163_v18 = vmul.f32 %v153_v15, %v153_v15  ;;  %v166_v22 = vsub.f32 %v143_v0, %v153_v15 }
  0x21   : > { %v164_v19 = vsub.f32 %v162_v17, %v163_v18 }
  0x23   : > { %v165_v20 = vmax.f32 %v164_v19, 0.0 }
  0x25   : > { %v167_v21 = vadd.f32 1e-05, %v165_v20 }
  0x27   : > { %281 = vrsqrt.f32 %v167_v21 }
  0x34   : > { %v282_v23 = vpop.eup %281 }
  0x35   : > { %v169_v24 = vmul.f32 %v282_v23, %v166_v22 }
  0x37   : > { %vm170_vm1 = vcmp.gt.f32.partialorder %v169_v24, 0.0  ;;  %v171_v25 = vmul.f32 0.2, %v169_v24 }
  0x39   : > { %v172_v26 = vsel %vm170_vm1, %v169_v24, %v171_v25 }
  0x3a   : > { %173 = vst [vmem:[%s142_s16] sm:$0xf] %v172_v26 }
  0x3b PF: > { %s11_s8 = sadd.s32 1, %s305_s8   ;;  %s359_s6 = smov %s301_s7 }
  0x3c   : > { %p8_p5 = scmp.ge.s32.totalorder %s11_s8, 4   ;;  %s360_s7 = smov %s362_s9 }
  0x3e   :  { %10 = sbr.rel (!%p8_p5) target bundleno = 2 (0x2), region = 54 }

// kernel: cycle_generator_forward.30
= control target key start
LH: loop header
LB: loop body
LE: loop exit
PB: predicated region body
PF: predicated region fallthrough
CT: control target
= control target key end

     0   :  { %s952_s9 = smov 0   ;;  %s954_s10 = smov 0   ;;  %s1065_s0 = inlined_call_operand.vmem [shape: bf16[16,1024], index: 0, kind: input, shape index: {}]   ;;  %s1066_s1 = inlined_call_operand.vmem [shape: bf16[1024,128], index: 1, kind: input, shape index: {}]   ;;  %s1067_s2 = inlined_call_operand.vmem [shape: f32[16,128], index: 2, kind: output, shape index: {}]  }
   0x1   :  { %s956_s11 = smov 0   ;;  %s958_s12 = smov 0  }
   0x2   :  { %s960_s13 = smov 0  }
   0x3 LB: > { %s24_s14 = sadd.s32 1, %s930_s12  ;;  %p47_p1 = scmp.ne.s32.totalorder %s922_s10, %s918_s9  ;;  %s934_s13 = sphi %s960_s13, %s12_s13   ;;  %s930_s12 = sphi %s958_s12, %s1071_s12   ;;  %s926_s11 = sphi %s956_s11, %s1070_s11   ;;  %s922_s10 = sphi %s954_s10, %s1069_s10   ;;  %s918_s9 = sphi %s952_s9, %s1068_s9  }
   0x4   : > { %p25_p0 = scmp.ge.s32.totalorder %s24_s14, 2  ;;  %p48_p2 = scmp.eq.s32.totalorder %s934_s13, 0 }
   0x5   : > { %s40_s16 = sadd.s32 1, %s922_s10  ;;  %p722_p5 = scmp.ge.s32.totalorder %s934_s13, 2 }
   0x6   : > { %s1073_s14 = smov (%p25_p0, %s24_s14), 0  ;;  %p49_p3 = por %p48_p2, %p47_p1 }
   0x7   : > { %s36_s15 = ssub.s32 %s930_s12, %s1073_s14  ;;  %129 = sbr.rel (%p722_p5) target bundleno = 18 (0x12), region = 16 }
   0x8   : > { %p38_p4 = scmp.eq.s32.totalorder %s36_s15, 0 }
   0xa   : > { %s987_s17 = scalar_select %p38_p4, %s922_s10, %s40_s16  }
   0xc   : > { %132 = sbr.rel (!%p49_p3) target bundleno = 18 (0x12), region = 20  ;;  %s134_s18 = sand.u32 (%p49_p3), 1, %s922_s10  }
   0xd   : > { %s772_s19 = sshll.u32 (%p49_p3), %s930_s12, 4  ;;  %s723_s20 = sshll.u32 (%p49_p3), %s134_s18, 5 }
   0xe   : > { %s142_s23 = scalar_lea.vmem (%p49_p3), %s1065_s0, %s772_s19  ;;  %s136_s24 = scalar_lea.vmem (%p49_p3), [#allocation3], %s723_s20 }
   0xf   : > { %v155_v0 = vld [vmem:[%s142_s23] sm:$0xff] (%p49_p3)  ;;  %v157_v1 = vld [vmem:[%s142_s23 + $0x8] sm:$0xff] (%p49_p3) }
  0x10   : > { %v159_v2 = vld [vmem:[%s142_s23 + $0x20] sm:$0xff] (%p49_p3)  ;;  %156 = vst [vmem:[%s136_s24] sm:$0xff] (%p49_p3), %v155_v0  ;;  %158 = vst [vmem:[%s136_s24 + $0x8] sm:$0xff] (%p49_p3), %v157_v1  ;;  %v161_v3 = vld [vmem:[%s142_s23 + $0x28] sm:$0xff] (%p49_p3) }
  0x11   : > { %160 = vst [vmem:[%s136_s24 + $0x10] sm:$0xff] %v159_v2  ;;  %162 = vst [vmem:[%s136_s24 + $0x18] sm:$0xff] %v161_v3 }
  0x12 PF: > { %p726_p6 = scmp.ge.s32.totalorder %s934_s13, 1  ;;  %p179_p7 = scmp.lt.s32.totalorder %s934_s13, 3 }
  0x14   : > { %p180_p8 = pnand %p726_p6, %p179_p7 }
  0x15   : > { %s186_s25 = sand.u32 (!%p180_p8), 1, %s918_s9   ;;  %s728_s26 = sshll.u32 (!%p180_p8), %s926_s11, 6 }
  0x16   : > { %183 = sbr.rel (%p180_p8) target bundleno = 283 (0x11b), region = 47  ;;  %s727_s27 = sshll.u32 (!%p180_p8), %s186_s25, 5 }
  0x17   : > { %p221_p9 = scmp.lt.s32.totalorder (!%p180_p8), %s728_s26, 127  ;;  %s1004_s4 = scalar_lea.vmem (!%p180_p8), [#allocation3], %s727_s27 }
  0x18   : > { %p730_p10 = scmp.ne.s32.totalorder (!%p180_p8), %s926_s11, 0 }
  0x1b   : > { %s1075_s26 = smov (!%p221_p9, %s728_s26), 127  ;;  %242 = sbr.rel (%p730_p10) target bundleno = 34 (0x22), region = 55 }
  0x1c   : > { %s729_s28 = sshll.u32 %s1075_s26, 2 }
  0x1d   : > { %s1002_s3 = scalar_lea.vmem %s1066_s1, %s729_s28 }
  0x20   : > { %v936_v4 = vmov 0.0  }
  0x21   : > { %243 = vst [vmem:[#allocation2] sm:$0xff] %v936_v4  ;;  %244 = vst [vmem:[#allocation2 + $0x8] sm:$0xff] %v936_v4 }
  0x22 PF: > { %v858_v5 = vld [vmem:[%s1002_s3 + $0x78] sm:$0xff]   ;;  %v862_v9 = vld [vmem:[%s1002_s3 + $0x70] sm:$0xff]   ;;  %v866_v13 = vld [vmem:[%s1002_s3 + $0x68] sm:$0xff]   ;;  %p767_p11 = scmp.ne.s32.totalorder %s926_s11, 1 }
  0x23   : > { %v859_v6 = vld [vmem:[%s1002_s3 + $0xf8] sm:$0xff]   ;;  %773 = vmatprep.subr.bf16.mxu0 %v858_v5  ;;  %v863_v10 = vld [vmem:[%s1002_s3 + $0xf0] sm:$0xff]   ;;  %v867_v14 = vld [vmem:[%s1002_s3 + $0xe8] sm:$0xff]  }
  0x24   : > { %v860_v7 = vld [vmem:[%s1002_s3 + $0x38] sm:$0xff]   ;;  %795 = vmatprep.subr.bf16.mxu1 %v859_v6  ;;  %v864_v11 = vld [vmem:[%s1002_s3 + $0x30] sm:$0xff]   ;;  %v868_v15 = vld [vmem:[%s1002_s3 + $0x28] sm:$0xff]  }
  0x25   : > { %v861_v8 = vld [vmem:[%s1002_s3 + $0xb8] sm:$0xff]   ;;  %774 = vmatpush3.bf16.msra.mxu0 %v860_v7  ;;  %v865_v12 = vld [vmem:[%s1002_s3 + $0xb0] sm:$0xff]   ;;  %v869_v16 = vld [vmem:[%s1002_s3 + $0xa8] sm:$0xff]  }
  0x26   : > { %796 = vmatpush3.bf16.msra.mxu1 %v861_v8  ;;  %775 = vmatprep.subr.bf16.mxu0 %v862_v9  ;;  %v870_v17 = vld [vmem:[%s1002_s3 + $0x60] sm:$0xff]   ;;  %v874_v21 = vld [vmem:[%s1002_s3 + $0x58] sm:$0xff]   ;;  %v878_v25 = vld [vmem:[%s1002_s3 + $0x50] sm:$0xff]  }
  0x27   : > { %797 = vmatprep.subr.bf16.mxu1 %v863_v10  ;;  %v871_v18 = vld [vmem:[%s1002_s3 + $0xe0] sm:$0xff]   ;;  %v875_v22 = vld [vmem:[%s1002_s3 + $0xd8] sm:$0xff]   ;;  %v879_v26 = vld [vmem:[%s1002_s3 + $0xd0] sm:$0xff]  }
  0x28   : > { %v872_v19 = vld [vmem:[%s1002_s3 + $0x20] sm:$0xff]   ;;  %v876_v23 = vld [vmem:[%s1002_s3 + $0x18] sm:$0xff]   ;;  %v880_v27 = vld [vmem:[%s1002_s3 + $0x10] sm:$0xff]  }
  0x29   : > { %776 = vmatpush3.bf16.msra.mxu0 %v864_v11  ;;  %v873_v20 = vld [vmem:[%s1002_s3 + $0xa0] sm:$0xff]   ;;  %v877_v24 = vld [vmem:[%s1002_s3 + $0x98] sm:$0xff]   ;;  %v881_v28 = vld [vmem:[%s1002_s3 + $0x90] sm:$0xff]  }
  0x2a   : > { %798 = vmatpush3.bf16.msra.mxu1 %v865_v12  ;;  %777 = vmatprep.subr.bf16.mxu0 %v866_v13  ;;  %v882_v29 = vld [vmem:[%s1002_s3 + $0x48] sm:$0xff]   ;;  %v886_v33 = vld [vmem:[%s1002_s3 + $0x40] sm:$0xff]  }
  0x2b   : > { %799 = vmatprep.subr.bf16.mxu1 %v867_v14  ;;  %v883_v30 = vld [vmem:[%s1002_s3 + $0xc8] sm:$0xff]   ;;  %v887_v34 = vld [vmem:[%s1002_s3 + $0xc0] sm:$0xff]  }
  0x2c   : > { %v884_v31 = vld [vmem:[%s1002_s3 + $0x8] sm:$0xff]   ;;  %v888_v35 = vld [vmem:[%s1002_s3] sm:$0xff]  }
  0x2d   : > { %778 = vmatpush3.bf16.msra.mxu0 %v868_v15  ;;  %v885_v32 = vld [vmem:[%s1002_s3 + $0x88] sm:$0xff]   ;;  %v889_v36 = vld [vmem:[%s1002_s3 + $0x80] sm:$0xff]  }
  0x2e   : > { %800 = vmatpush3.bf16.msra.mxu1 %v869_v16  ;;  %779 = vmatprep.subr.bf16.mxu0 %v870_v17  ;;  %v890_v37 = vld [vmem:[%s1004_s4] ss:$16 sps:$4 sm:$0xff]   ;;  %v892_v38 = vld [vmem:[%s1004_s4 + $0x4] ss:$16 sps:$4 sm:$0xff]   ;;  %v893_v39 = vld [vmem:[%s1004_s4 + $0x8] ss:$16 sps:$4 sm:$0xff]  }
  0x2f   : > { %801 = vmatprep.subr.bf16.mxu1 %v871_v18  ;;  %v895_v40 = vld [vmem:[%s1004_s4 + $0xc] ss:$16 sps:$4 sm:$0xff]   ;;  %559 = vmatprep.mubr.bf16.mxu0 %v892_v38  ;;  %v245_v48 = vld [vmem:[#allocation2] sm:$0xff] }
  0x30   : > { %600 = vmatprep.mubr.bf16.mxu1 %v895_v40  ;;  %v246_v56 = vld [vmem:[#allocation2 + $0x8] sm:$0xff] }
  0x31   : > { %780 = vmatpush3.bf16.msra.mxu0 %v872_v19 }
  0x32   : > { %802 = vmatpush3.bf16.msra.mxu1 %v873_v20  ;;  %781 = vmatprep.subr.bf16.mxu0 %v874_v21 }
  0x33   : > { %803 = vmatprep.subr.bf16.mxu1 %v875_v22 }
  0x35   : > { %782 = vmatpush3.bf16.msra.mxu0 %v876_v23 }
  0x36   : > { %804 = vmatpush3.bf16.msra.mxu1 %v877_v24  ;;  %783 = vmatprep.subr.bf16.mxu0 %v878_v25 }
  0x37   : > { %805 = vmatprep.subr.bf16.mxu1 %v879_v26 }
  0x39   : > { %784 = vmatpush3.bf16.msra.mxu0 %v880_v27 }
  0x3a   : > { %806 = vmatpush3.bf16.msra.mxu1 %v881_v28  ;;  %785 = vmatprep.subr.bf16.mxu0 %v882_v29 }
  0x3b   : > { %807 = vmatprep.subr.bf16.mxu1 %v883_v30 }
  0x3d   : > { %786 = vmatpush3.bf16.msra.mxu0 %v884_v31 }
  0x3e   : > { %808 = vmatpush3.bf16.msra.mxu1 %v885_v32  ;;  %787 = vmatprep.subr.bf16.mxu0 %v886_v33 }
  0x3f   : > { %809 = vmatprep.subr.bf16.mxu1 %v887_v34 }
  0x41   : > { %788 = vmatpush3.bf16.msra.mxu0 %v888_v35 }
  0x42   : > { %810 = vmatpush3.bf16.msra.mxu1 %v889_v36 }
  0x44   : > { %560 = vmatmul.mubr.bf16.vlgmr.msra.gmra.mxu0 %v890_v37 }
  0x45   : > { %601 = vmatmul.mubr.bf16.vlgmr.msra.gmra.mxu1 %v893_v39 }
 0x104   : > { %v789_v41 = vpop.f32.mrf.mxu0 }
 0x105   : > { %v811_v42 = vpop.f32.mrf.mxu1 }
 0x106   : > { %v790_v43 = vpop.f32.mrf.mxu0 }
 0x107   : > { %v791_v44 = vadd.f32 %v790_v43, %v789_v41  ;;  %v812_v45 = vpop.f32.mrf.mxu1 }
 0x108   : > { %v813_v46 = vadd.f32 %v812_v45, %v811_v42  ;;  %v792_v47 = vpop.f32.mrf.mxu0 }
 0x109   : > { %v814_v49 = vpop.f32.mrf.mxu1 }
 0x10a   : > { %v603_v50 = vadd.f32 %v813_v46, %v791_v44  ;;  %v793_v51 = vpop.f32.mrf.mxu0 }
 0x10b   : > { %v794_v52 = vadd.f32 %v793_v51, %v792_v47  ;;  %v815_v53 = vpop.f32.mrf.mxu1 }
 0x10c   : > { %v609_v54 = vadd.f32 %v603_v50, %v245_v48  ;;  %v816_v55 = vadd.f32 %v815_v53, %v814_v49 }
 0x10e   : > { %611 = vst [vmem:[#allocation2] sm:$0xff] %v609_v54  ;;  %v606_v57 = vadd.f32 %v816_v55, %v794_v52  ;;  %616 = sbr.rel (%p767_p11) target bundleno = 283 (0x11b), region = 59 }
 0x110   : > { %v610_v58 = vadd.f32 %v606_v57, %v246_v56 }
 0x112   : > { %612 = vst [vmem:[#allocation2 + $0x8] sm:$0xff] %v610_v58 }
 0x115   : > { %v617_v59 = vld [vmem:[#allocation2] sm:$0xff] }
 0x116   : > { %619 = vst [vmem:[%s1067_s2] sm:$0xff] %v617_v59 }
 0x119   : > { %v618_v60 = vld [vmem:[#allocation2 + $0x8] sm:$0xff] }
 0x11a   : > { %620 = vst [vmem:[%s1067_s2 + $0x8] sm:$0xff] %v618_v60 }
 0x11b PF: > { %s12_s13 = sadd.s32 1, %s934_s13   ;;  %s1068_s9 = smov %s922_s10 }
 0x11c   : > { %p9_p12 = scmp.ge.s32.totalorder %s12_s13, 4   ;;  %s1069_s10 = smov %s987_s17 }
 0x11d   : > { %s1070_s11 = smov %s930_s12  ;;  %s1071_s12 = smov %s1073_s14 }
 0x11e   :  { %11 = sbr.rel (!%p9_p12) target bundleno = 3 (0x3), region = 97 }

// kernel: cycle_generator_forward.33
= control target key start
LH: loop header
LB: loop body
LE: loop exit
PB: predicated region body
PF: predicated region fallthrough
CT: control target
= control target key end

     0   :  { %s315_s6 = smov 0   ;;  %s317_s7 = smov 0   ;;  %s355_s0 = inlined_call_operand.vmem [shape: f32[2,4,128], index: 0, kind: input, shape index: {}]   ;;  %s356_s1 = inlined_call_operand.vmem [shape: f32[2,4,128], index: 1, kind: output, shape index: {}]  }
   0x1   :  { %s319_s8 = smov 0  }
   0x2 LB: > { %s23_s9 = sadd.s32 1, %s299_s7  ;;  %p250_p0 = scmp.ge.s32.totalorder %s303_s8, 1  ;;  %s303_s8 = sphi %s319_s8, %s11_s8   ;;  %s299_s7 = sphi %s317_s7, %s358_s7   ;;  %s295_s6 = sphi %s315_s6, %s357_s6  }
   0x3   : > { %p25_p1 = scmp.ge.s32.totalorder %s23_s9, 2  ;;  %p105_p2 = scmp.lt.s32.totalorder %s303_s8, 3 }
   0x5   : > { %s360_s9 = smov (%p25_p1, %s23_s9), 0  ;;  %p106_p3 = pnand %p250_p0, %p105_p2 }
   0x6   : > { %p129_p4 = scmp.lt.s32.totalorder (!%p106_p3), %s295_s6, 1 }
   0x7   : > { %109 = sbr.rel (%p106_p3) target bundleno = 58 (0x3a), region = 24 }
   0xc   : > { %s362_s6 = smov (!%p129_p4, %s295_s6), 1  ;;  %vm144_vm0 = vcmask 1043456  }
   0xd   : > { %s251_s10 = sshll.u32 %s362_s6, 2 }
   0xe   : > { %s135_s13 = scalar_lea.vmem %s355_s0, %s251_s10  ;;  %s142_s16 = scalar_lea.vmem %s356_s1, %s251_s10 }
   0xf   : > { %v143_v0 = vld [vmem:[%s135_s13] sm:$0xf] }
  0x10   : > { %v145_v1 = vsel %vm144_vm0, %v143_v0, 0.0  ;;  %v154_v2 = vmul.f32 %v143_v0, %v143_v0 }
  0x11   : > { %v146_v3 = vrot.slane %v145_v1, 4 }
  0x12   : > { %v155_v4 = vsel %vm144_vm0, %v154_v2, 0.0 }
  0x13   : > { %v147_v5 = vadd.f32 %v146_v3, %v145_v1  ;;  %v156_v6 = vrot.slane %v155_v4, 4 }
  0x15   : > { %v148_v7 = vrot.slane %v147_v5, 2  ;;  %v157_v8 = vadd.f32 %v156_v6, %v155_v4 }
  0x17   : > { %v149_v9 = vadd.f32 %v148_v7, %v147_v5  ;;  %v158_v10 = vrot.slane %v157_v8, 2 }
  0x19   : > { %v150_v11 = vrot.slane %v149_v9, 1  ;;  %v159_v12 = vadd.f32 %v158_v10, %v157_v8 }
  0x1b   : > { %v151_v13 = vadd.f32 %v150_v11, %v149_v9  ;;  %v160_v14 = vrot.slane %v159_v12, 1 }
  0x1d   : > { %v153_v15 = vmul.f32 0.25, %v151_v13  ;;  %v161_v16 = vadd.f32 %v160_v14, %v159_v12 }
  0x1f   : > { %v162_v17 = vmul.f32 0.25, %v161_v16  ;;  %v163_v18 = vmul.f32 %v153_v15, %v153_v15  ;;  %v166_v22 = vsub.f32 %v143_v0, %v153_v15 }
  0x21   : > { %v164_v19 = vsub.f32 %v162_v17, %v163_v18 }
  0x23   : > { %v165_v20 = vmax.f32 %v164_v19, 0.0 }
  0x25   : > { %v167_v21 = vadd.f32 1e-05, %v165_v20 }
  0x27   : > { %279 = vrsqrt.f32 %v167_v21 }
  0x34   : > { %v280_v23 = vpop.eup %279 }
  0x35   : > { %v169_v24 = vmul.f32 %v280_v23, %v166_v22 }
  0x37   : > { %v170_v25 = vmax.f32 %v169_v24, 0.0 }
  0x39   : > { %171 = vst [vmem:[%s142_s16] sm:$0xf] %v170_v25 }
  0x3a PF: > { %s11_s8 = sadd.s32 1, %s303_s8   ;;  %s357_s6 = smov %s299_s7 }
  0x3b   : > { %p8_p5 = scmp.ge.s32.totalorder %s11_s8, 4   ;;  %s358_s7 = smov %s360_s9 }
  0x3d   :  { %10 = sbr.rel (!%p8_p5) target bundleno = 2 (0x2), region = 54 }

// kernel: cycle_generator_forward.32
= control target key start
LH: loop header
LB: loop body
LE: loop exit
PB: predicated region body
PF: predicated region fallthrough
CT: control target
= control target key end

     0   :  { %s653_s9 = smov 0   ;;  %s655_s10 = smov 0   ;;  %s741_s0 = inlined_call_operand.vmem [shape: bf16[16,1152], index: 0, kind: input, shape index: {}]   ;;  %s742_s1 = inlined_call_operand.vmem [shape: bf16[1152,128], index: 1, kind: input, shape index: {}]   ;;  %s743_s2 = inlined_call_operand.vmem [shape: f32[16,128], index: 2, kind: output, shape index: {}]  }
   0x1   :  { %s657_s11 = smov 0   ;;  %s659_s12 = smov 0  }
   0x2   :  { %s661_s13 = smov 0  }
   0x3 LB: > { %s24_s14 = sadd.s32 1, %s629_s12  ;;  %p47_p1 = scmp.ne.s32.totalorder %s621_s10, %s617_s9  ;;  %s633_s13 = sphi %s661_s13, %s12_s13   ;;  %s629_s12 = sphi %s659_s12, %s747_s12   ;;  %s625_s11 = sphi %s657_s11, %s746_s11   ;;  %s621_s10 = sphi %s655_s10, %s745_s10   ;;  %s617_s9 = sphi %s653_s9, %s744_s9  }
   0x4   : > { %p25_p0 = scmp.ge.s32.totalorder %s24_s14, 9  ;;  %p48_p2 = scmp.eq.s32.totalorder %s633_s13, 0 }
   0x5   : > { %s40_s16 = sadd.s32 1, %s621_s10  ;;  %p492_p5 = scmp.ge.s32.totalorder %s633_s13, 9 }
   0x6   : > { %s749_s14 = smov (%p25_p0, %s24_s14), 0  ;;  %p49_p3 = por %p48_p2, %p47_p1 }
   0x7   : > { %s36_s15 = ssub.s32 %s629_s12, %s749_s14  ;;  %129 = sbr.rel (%p492_p5) target bundleno = 17 (0x11), region = 16 }
   0x8   : > { %p38_p4 = scmp.eq.s32.totalorder %s36_s15, 0 }
   0xa   : > { %s688_s17 = scalar_select %p38_p4, %s621_s10, %s40_s16  }
   0xc   : > { %132 = sbr.rel (!%p49_p3) target bundleno = 17 (0x11), region = 20  ;;  %s134_s18 = sand.u32 (%p49_p3), 1, %s621_s10  }
   0xd   : > { %s494_s19 = sshll.u32 (%p49_p3), %s629_s12, 2  ;;  %s493_s20 = sshll.u32 (%p49_p3), %s134_s18, 3 }
   0xe   : > { %s141_s23 = scalar_lea.vmem (%p49_p3), %s741_s0, %s494_s19  ;;  %s136_s24 = scalar_lea.vmem (%p49_p3), [#allocation3], %s493_s20 }
   0xf   : > { %v158_v0 = vld [vmem:[%s141_s23] sm:$0xf] (%p49_p3)  ;;  %v160_v1 = vld [vmem:[%s141_s23 + $0x24] sm:$0xf] (%p49_p3) }
  0x10   : > { %159 = vst [vmem:[%s136_s24] sm:$0xf] (%p49_p3), %v158_v0  ;;  %161 = vst [vmem:[%s136_s24 + $0x4] sm:$0xf] (%p49_p3), %v160_v1 }
  0x11 PF: > { %p495_p6 = scmp.ge.s32.totalorder %s633_s13, 1  ;;  %p200_p7 = scmp.lt.s32.totalorder %s633_s13, 10 }
  0x13   : > { %p201_p8 = pnand %p495_p6, %p200_p7 }
  0x14   : > { %s207_s25 = sand.u32 (!%p201_p8), 1, %s617_s9   ;;  %s497_s26 = sshll.u32 (!%p201_p8), %s625_s11, 4 }
  0x15   : > { %204 = sbr.rel (%p201_p8) target bundleno = 274 (0x112), region = 65  ;;  %s700_s27 = sshll.u32 (!%p201_p8), %s207_s25, 3 }
  0x16   : > { %p241_p9 = scmp.lt.s32.totalorder (!%p201_p8), %s497_s26, 143  ;;  %s209_s4 = scalar_lea.vmem (!%p201_p8), [#allocation3], %s700_s27 }
  0x17   : > { %p499_p10 = scmp.ne.s32.totalorder (!%p201_p8), %s625_s11, 0 }
  0x1a   : > { %s751_s26 = smov (!%p241_p9, %s497_s26), 143  ;;  %262 = sbr.rel (%p499_p10) target bundleno = 33 (0x21), region = 73 }
  0x1b   : > { %s498_s28 = sshll.u32 %s751_s26, 2 }
  0x1c   : > { %s705_s3 = scalar_lea.vmem %s742_s1, %s498_s28 }
  0x1f   : > { %v635_v2 = vmov 0.0  }
  0x20   : > { %263 = vst [vmem:[#allocation2] sm:$0xff] %v635_v2  ;;  %264 = vst [vmem:[#allocation2 + $0x8] sm:$0xff] %v635_v2 }
  0x21 PF: > { %v586_v3 = vld [vmem:[%s705_s3 + $0x38] sm:$0xff]   ;;  %v636_v4 = vmov 0.0   ;;  %v587_v5 = vld [vmem:[%s705_s3 + $0x30] sm:$0xff]   ;;  %vm637_vm0 = vmmov 0   ;;  %v588_v6 = vld [vmem:[%s705_s3 + $0x28] sm:$0xff]   ;;  %p509_p11 = scmp.ne.s32.totalorder %s625_s11, 8 }
  0x22   : > { %523 = vmatprep.subr.bf16.mxu0 %v636_v4  ;;  %539 = vmatprep.mubr.msk.bf16.mxu0 %vm637_vm0, %v636_v4  ;;  %v589_v7 = vld [vmem:[%s705_s3 + $0x20] sm:$0xff]   ;;  %v590_v8 = vld [vmem:[%s705_s3 + $0x18] sm:$0xff]   ;;  %v591_v9 = vld [vmem:[%s705_s3 + $0x10] sm:$0xff]  }
  0x23   : > { %524 = vmatpush3.bf16.msra.mxu0 %v586_v3  ;;  %v592_v10 = vld [vmem:[%s705_s3 + $0x8] sm:$0xff]   ;;  %v593_v11 = vld [vmem:[%s705_s3] sm:$0xff]   ;;  %v594_v12 = vld [vmem:[%s209_s4] sm:$0xff]  }
  0x24   : > { %525 = vmatprep.subr.bf16.mxu0 %v636_v4 }
  0x27   : > { %526 = vmatpush3.bf16.msra.mxu0 %v587_v5  ;;  %v265_v13 = vld [vmem:[#allocation2] sm:$0xff]  ;;  %v266_v17 = vld [vmem:[#allocation2 + $0x8] sm:$0xff] }
  0x28   : > { %527 = vmatprep.subr.bf16.mxu0 %v636_v4 }
  0x2b   : > { %528 = vmatpush3.bf16.msra.mxu0 %v588_v6 }
  0x2c   : > { %529 = vmatprep.subr.bf16.mxu0 %v636_v4 }
  0x2f   : > { %530 = vmatpush3.bf16.msra.mxu0 %v589_v7 }
  0x30   : > { %531 = vmatprep.subr.bf16.mxu0 %v636_v4 }
  0x33   : > { %532 = vmatpush3.bf16.msra.mxu0 %v590_v8 }
  0x34   : > { %533 = vmatprep.subr.bf16.mxu0 %v636_v4 }
  0x37   : > { %534 = vmatpush3.bf16.msra.mxu0 %v591_v9 }
  0x38   : > { %535 = vmatprep.subr.bf16.mxu0 %v636_v4 }
  0x3b   : > { %536 = vmatpush3.bf16.msra.mxu0 %v592_v10 }
  0x3c   : > { %537 = vmatprep.subr.bf16.mxu0 %v636_v4 }
  0x3f   : > { %538 = vmatpush3.bf16.msra.mxu0 %v593_v11 }
  0x42   : > { %540 = vmatmul.mubr.bf16.vlgmr.msra.gmra.mxu0 %v594_v12 }
 0x102   : > { %v373_v14 = vpop.f32.mrf.mxu0 }
 0x103   : > { %v380_v15 = vadd.f32 %v373_v14, %v265_v13 }
 0x104   : > { %v541_v16 = vpop.f32.mrf.mxu0 }
 0x105   : > { %382 = vst [vmem:[#allocation2] sm:$0xff] %v380_v15  ;;  %387 = sbr.rel (%p509_p11) target bundleno = 274 (0x112), region = 77 }
 0x106   : > { %v376_v18 = vpop.f32.mrf.mxu0 }
 0x107   : > { %v381_v19 = vadd.f32 %v376_v18, %v266_v17 }
 0x108   : > { %v542_v20 = vpop.f32.mrf.mxu0 }
 0x109   : > { %383 = vst [vmem:[#allocation2 + $0x8] sm:$0xff] %v381_v19 }
 0x10c   : > { %v388_v21 = vld [vmem:[#allocation2] sm:$0xff] }
 0x10d   : > { %390 = vst [vmem:[%s743_s2] sm:$0xff] %v388_v21 }
 0x110   : > { %v389_v22 = vld [vmem:[#allocation2 + $0x8] sm:$0xff] }
 0x111   : > { %391 = vst [vmem:[%s743_s2 + $0x8] sm:$0xff] %v389_v22 }
 0x112 PF: > { %s12_s13 = sadd.s32 1, %s633_s13   ;;  %s744_s9 = smov %s621_s10 }
 0x113   : > { %p9_p12 = scmp.ge.s32.totalorder %s12_s13, 11   ;;  %s745_s10 = smov %s688_s17 }
 0x114   : > { %s746_s11 = smov %s629_s12  ;;  %s747_s12 = smov %s749_s14 }
 0x115   :  { %11 = sbr.rel (!%p9_p12) target bundleno = 3 (0x3), region = 115 }

// kernel: cycle_generator_forward.35
= control target key start
LH: loop header
LB: loop body
LE: loop exit
PB: predicated region body
PF: predicated region fallthrough
CT: control target
= control target key end

     0   :  { %s392_s9 = smov 0   ;;  %s394_s10 = smov 0   ;;  %s433_s0 = inlined_call_operand.vmem [shape: f32[2,4,128], index: 0, kind: input, shape index: {}]   ;;  %s434_s1 = inlined_call_operand.vmem [shape: f32[2,4,128], index: 1, kind: input, shape index: {}]   ;;  %s435_s2 = inlined_call_operand.vmem [shape: f32[2,4,128], index: 2, kind: output, shape index: {}]  }
   0x1   :  { %s396_s11 = smov 0  }
   0x2 LB: > { %s24_s12 = sadd.s32 1, %s371_s10  ;;  %p321_p0 = scmp.ge.s32.totalorder %s375_s11, 1  ;;  %s375_s11 = sphi %s396_s11, %s12_s11   ;;  %s371_s10 = sphi %s394_s10, %s437_s10   ;;  %s367_s9 = sphi %s392_s9, %s436_s9  }
   0x3   : > { %p26_p1 = scmp.ge.s32.totalorder %s24_s12, 2  ;;  %p144_p2 = scmp.lt.s32.totalorder %s375_s11, 3 }
   0x5   : > { %s439_s12 = smov (%p26_p1, %s24_s12), 0  ;;  %p145_p3 = pnand %p321_p0, %p144_p2 }
   0x6   : > { %p177_p4 = scmp.lt.s32.totalorder (!%p145_p3), %s367_s9, 1 }
   0x7   : > { %148 = sbr.rel (%p145_p3) target bundleno = 58 (0x3a), region = 28 }
   0xc   : > { %s441_s9 = smov (!%p177_p4, %s367_s9), 1  ;;  %vm199_vm0 = vcmask 1043456  }
   0xd   : > { %s410_s13 = sshll.u32 %s441_s9, 2 }
   0xe   : > { %s183_s16 = scalar_lea.vmem %s433_s0, %s410_s13  ;;  %s190_s19 = scalar_lea.vmem %s434_s1, %s410_s13 }
   0xf   : > { %v198_v0 = vld [vmem:[%s183_s16] sm:$0xf]  ;;  %s197_s22 = scalar_lea.vmem %s435_s2, %s410_s13 }
  0x10   : > { %v200_v1 = vsel %vm199_vm0, %v198_v0, 0.0  ;;  %v209_v2 = vmul.f32 %v198_v0, %v198_v0  ;;  %v225_v24 = vld [vmem:[%s190_s19] sm:$0xf] }
  0x11   : > { %v201_v3 = vrot.slane %v200_v1, 4 }
  0x12   : > { %v210_v4 = vsel %vm199_vm0, %v209_v2, 0.0 }
  0x13   : > { %v202_v5 = vadd.f32 %v201_v3, %v200_v1  ;;  %v211_v6 = vrot.slane %v210_v4, 4 }
  0x15   : > { %v203_v7 = vrot.slane %v202_v5, 2  ;;  %v212_v8 = vadd.f32 %v211_v6, %v210_v4 }
  0x17   : > { %v204_v9 = vadd.f32 %v203_v7, %v202_v5  ;;  %v213_v10 = vrot.slane %v212_v8, 2 }
  0x19   : > { %v205_v11 = vrot.slane %v204_v9, 1  ;;  %v214_v12 = vadd.f32 %v213_v10, %v212_v8 }
  0x1b   : > { %v206_v13 = vadd.f32 %v205_v11, %v204_v9  ;;  %v215_v14 = vrot.slane %v214_v12, 1 }
  0x1d   : > { %v208_v15 = vmul.f32 0.25, %v206_v13  ;;  %v216_v16 = vadd.f32 %v215_v14, %v214_v12 }
  0x1f   : > { %v217_v17 = vmul.f32 0.25, %v216_v16  ;;  %v218_v18 = vmul.f32 %v208_v15, %v208_v15  ;;  %v221_v22 = vsub.f32 %v198_v0, %v208_v15 }
  0x21   : > { %v219_v19 = vsub.f32 %v217_v17, %v218_v18 }
  0x23   : > { %v220_v20 = vmax.f32 %v219_v19, 0.0 }
  0x25   : > { %v222_v21 = vadd.f32 1e-05, %v220_v20 }
  0x27   : > { %351 = vrsqrt.f32 %v222_v21 }
  0x34   : > { %v352_v23 = vpop.eup %351 }
  0x35   : > { %v224_v25 = vmul.f32 %v352_v23, %v221_v22 }
  0x37   : > { %v226_v26 = vadd.f32 %v225_v24, %v224_v25 }
  0x39   : > { %227 = vst [vmem:[%s197_s22] sm:$0xf] %v226_v26 }
  0x3a PF: > { %s12_s11 = sadd.s32 1, %s375_s11   ;;  %s436_s9 = smov %s371_s10 }
  0x3b   : > { %p9_p5 = scmp.ge.s32.totalorder %s12_s11, 4   ;;  %s437_s10 = smov %s439_s12 }
  0x3d   :  { %11 = sbr.rel (!%p9_p5) target bundleno = 2 (0x2), region = 61 }

// kernel: cycle_generator_forward.43
= control target key start
LH: loop header
LB: loop body
LE: loop exit
PB: predicated region body
PF: predicated region fallthrough
CT: control target
= control target key end

     0   :  { %s644_s1 = inlined_call_operand.vmem [shape: bf16[512,128], index: 1, kind: input, shape index: {}]   ;;  %s645_s0 = inlined_call_operand.vmem [shape: bf16[16,512], index: 0, kind: input, shape index: {}]   ;;  %s646_s2 = inlined_call_operand.vmem [shape: f32[16,128], index: 2, kind: output, shape index: {}]  }
   0x1   :  { %v477_v0 = vld [vmem:[%s644_s1 + $0x78] sm:$0xff]   ;;  %v481_v4 = vld [vmem:[%s644_s1 + $0x70] sm:$0xff]   ;;  %v485_v8 = vld [vmem:[%s644_s1 + $0x68] sm:$0xff]  }
   0x2   :  { %v478_v1 = vld [vmem:[%s644_s1 + $0xf8] sm:$0xff]   ;;  %433 = vmatprep.subr.bf16.mxu0 %v477_v0  ;;  %v482_v5 = vld [vmem:[%s644_s1 + $0xf0] sm:$0xff]   ;;  %v486_v9 = vld [vmem:[%s644_s1 + $0xe8] sm:$0xff]  }
   0x3   :  { %v479_v2 = vld [vmem:[%s644_s1 + $0x38] sm:$0xff]   ;;  %455 = vmatprep.subr.bf16.mxu1 %v478_v1  ;;  %v483_v6 = vld [vmem:[%s644_s1 + $0x30] sm:$0xff]   ;;  %v487_v10 = vld [vmem:[%s644_s1 + $0x28] sm:$0xff]  }
   0x4   :  { %v480_v3 = vld [vmem:[%s644_s1 + $0xb8] sm:$0xff]   ;;  %434 = vmatpush3.bf16.msra.mxu0 %v479_v2  ;;  %v484_v7 = vld [vmem:[%s644_s1 + $0xb0] sm:$0xff]   ;;  %v488_v11 = vld [vmem:[%s644_s1 + $0xa8] sm:$0xff]  }
   0x5   :  { %456 = vmatpush3.bf16.msra.mxu1 %v480_v3  ;;  %435 = vmatprep.subr.bf16.mxu0 %v481_v4  ;;  %v489_v12 = vld [vmem:[%s644_s1 + $0x60] sm:$0xff]   ;;  %v493_v16 = vld [vmem:[%s644_s1 + $0x58] sm:$0xff]   ;;  %v497_v20 = vld [vmem:[%s644_s1 + $0x50] sm:$0xff]  }
   0x6   :  { %457 = vmatprep.subr.bf16.mxu1 %v482_v5  ;;  %v490_v13 = vld [vmem:[%s644_s1 + $0xe0] sm:$0xff]   ;;  %v494_v17 = vld [vmem:[%s644_s1 + $0xd8] sm:$0xff]   ;;  %v498_v21 = vld [vmem:[%s644_s1 + $0xd0] sm:$0xff]  }
   0x7   :  { %v491_v14 = vld [vmem:[%s644_s1 + $0x20] sm:$0xff]   ;;  %v495_v18 = vld [vmem:[%s644_s1 + $0x18] sm:$0xff]   ;;  %v499_v22 = vld [vmem:[%s644_s1 + $0x10] sm:$0xff]  }
   0x8   :  { %436 = vmatpush3.bf16.msra.mxu0 %v483_v6  ;;  %v492_v15 = vld [vmem:[%s644_s1 + $0xa0] sm:$0xff]   ;;  %v496_v19 = vld [vmem:[%s644_s1 + $0x98] sm:$0xff]   ;;  %v500_v23 = vld [vmem:[%s644_s1 + $0x90] sm:$0xff]  }
   0x9   :  { %458 = vmatpush3.bf16.msra.mxu1 %v484_v7  ;;  %437 = vmatprep.subr.bf16.mxu0 %v485_v8  ;;  %v501_v24 = vld [vmem:[%s644_s1 + $0x48] sm:$0xff]   ;;  %v505_v28 = vld [vmem:[%s644_s1 + $0x40] sm:$0xff]  }
   0xa   :  { %459 = vmatprep.subr.bf16.mxu1 %v486_v9  ;;  %v502_v25 = vld [vmem:[%s644_s1 + $0xc8] sm:$0xff]   ;;  %v506_v29 = vld [vmem:[%s644_s1 + $0xc0] sm:$0xff]  }
   0xb   :  { %v503_v26 = vld [vmem:[%s644_s1 + $0x8] sm:$0xff]   ;;  %v507_v30 = vld [vmem:[%s644_s1] sm:$0xff]  }
   0xc   :  { %438 = vmatpush3.bf16.msra.mxu0 %v487_v10  ;;  %v504_v27 = vld [vmem:[%s644_s1 + $0x88] sm:$0xff]   ;;  %v508_v31 = vld [vmem:[%s644_s1 + $0x80] sm:$0xff]  }
   0xd   :  { %460 = vmatpush3.bf16.msra.mxu1 %v488_v11  ;;  %439 = vmatprep.subr.bf16.mxu0 %v489_v12  ;;  %v509_v32 = vld [vmem:[%s645_s0] ss:$16 sps:$4 sm:$0xff]   ;;  %v511_v33 = vld [vmem:[%s645_s0 + $0x4] ss:$16 sps:$4 sm:$0xff]   ;;  %v512_v34 = vld [vmem:[%s645_s0 + $0x8] ss:$16 sps:$4 sm:$0xff]  }
   0xe   :  { %461 = vmatprep.subr.bf16.mxu1 %v490_v13  ;;  %v514_v35 = vld [vmem:[%s645_s0 + $0xc] ss:$16 sps:$4 sm:$0xff]   ;;  %332 = vmatprep.mubr.bf16.mxu0 %v511_v33 }
   0xf   :  { %373 = vmatprep.mubr.bf16.mxu1 %v514_v35 }
  0x10   :  { %440 = vmatpush3.bf16.msra.mxu0 %v491_v14 }
  0x11   :  { %462 = vmatpush3.bf16.msra.mxu1 %v492_v15  ;;  %441 = vmatprep.subr.bf16.mxu0 %v493_v16 }
  0x12   :  { %463 = vmatprep.subr.bf16.mxu1 %v494_v17 }
  0x14   :  { %442 = vmatpush3.bf16.msra.mxu0 %v495_v18 }
  0x15   :  { %464 = vmatpush3.bf16.msra.mxu1 %v496_v19  ;;  %443 = vmatprep.subr.bf16.mxu0 %v497_v20 }
  0x16   :  { %465 = vmatprep.subr.bf16.mxu1 %v498_v21 }
  0x18   :  { %444 = vmatpush3.bf16.msra.mxu0 %v499_v22 }
  0x19   :  { %466 = vmatpush3.bf16.msra.mxu1 %v500_v23  ;;  %445 = vmatprep.subr.bf16.mxu0 %v501_v24 }
  0x1a   :  { %467 = vmatprep.subr.bf16.mxu1 %v502_v25 }
  0x1c   :  { %446 = vmatpush3.bf16.msra.mxu0 %v503_v26 }
  0x1d   :  { %468 = vmatpush3.bf16.msra.mxu1 %v504_v27  ;;  %447 = vmatprep.subr.bf16.mxu0 %v505_v28 }
  0x1e   :  { %469 = vmatprep.subr.bf16.mxu1 %v506_v29 }
  0x20   :  { %448 = vmatpush3.bf16.msra.mxu0 %v507_v30 }
  0x21   :  { %470 = vmatpush3.bf16.msra.mxu1 %v508_v31 }
  0x23   :  { %333 = vmatmul.mubr.bf16.vlgmr.msra.gmra.mxu0 %v509_v32 }
  0x24   :  { %374 = vmatmul.mubr.bf16.vlgmr.msra.gmra.mxu1 %v512_v34 }
  0xe3   :  { %v449_v36 = vpop.f32.mrf.mxu0 }
  0xe4   :  { %v471_v37 = vpop.f32.mrf.mxu1 }
  0xe5   :  { %v450_v38 = vpop.f32.mrf.mxu0 }
  0xe6   :  { %v451_v39 = vadd.f32 %v450_v38, %v449_v36  ;;  %v472_v40 = vpop.f32.mrf.mxu1 }
  0xe7   :  { %v473_v41 = vadd.f32 %v472_v40, %v471_v37  ;;  %v452_v42 = vpop.f32.mrf.mxu0 }
  0xe8   :  { %v474_v43 = vpop.f32.mrf.mxu1 }
  0xe9   :  { %v376_v44 = vadd.f32 %v473_v41, %v451_v39  ;;  %v453_v45 = vpop.f32.mrf.mxu0 }
  0xea   :  { %v454_v46 = vadd.f32 %v453_v45, %v452_v42  ;;  %v475_v47 = vpop.f32.mrf.mxu1 }
  0xeb   :  { %391 = vst [vmem:[%s646_s2] sm:$0xff] %v376_v44  ;;  %v476_v48 = vadd.f32 %v475_v47, %v474_v43 }
  0xed   :  { %v379_v49 = vadd.f32 %v476_v48, %v454_v46 }
  0xef   :  { %392 = vst [vmem:[%s646_s2 + $0x8] sm:$0xff] %v379_v49 }

// kernel: cycle_generator_forward.45
= control target key start
LH: loop header
LB: loop body
LE: loop exit
PB: predicated region body
PF: predicated region fallthrough
CT: control target
= control target key end

     0   :  { %s421_s1 = inlined_call_operand.vmem [shape: bf16[256,128], index: 1, kind: input, shape index: {}]   ;;  %s422_s0 = inlined_call_operand.vmem [shape: bf16[32,256], index: 0, kind: input, shape index: {}]   ;;  %s423_s2 = inlined_call_operand.vmem [shape: f32[32,128], index: 2, kind: output, shape index: {}]  }
   0x1   :  { %v312_v0 = vld [vmem:[%s421_s1 + $0x78] sm:$0xff]   ;;  %v314_v2 = vld [vmem:[%s421_s1 + $0x70] sm:$0xff]   ;;  %v316_v4 = vld [vmem:[%s421_s1 + $0x68] sm:$0xff]  }
   0x2   :  { %v313_v1 = vld [vmem:[%s421_s1 + $0x38] sm:$0xff]   ;;  %268 = vmatprep.subr.bf16.mxu0 %v312_v0  ;;  %296 = vmatprep.subr.bf16.mxu1 %v312_v0  ;;  %v315_v3 = vld [vmem:[%s421_s1 + $0x30] sm:$0xff]   ;;  %v317_v5 = vld [vmem:[%s421_s1 + $0x28] sm:$0xff]  }
   0x3   :  { %269 = vmatpush3.bf16.msra.mxu0 %v313_v1  ;;  %304 = vmatpush3.bf16.msra.mxu1 %v313_v1  ;;  %v318_v6 = vld [vmem:[%s421_s1 + $0x60] sm:$0xff]   ;;  %v320_v8 = vld [vmem:[%s421_s1 + $0x58] sm:$0xff]   ;;  %v322_v10 = vld [vmem:[%s421_s1 + $0x50] sm:$0xff]  }
   0x4   :  { %270 = vmatprep.subr.bf16.mxu0 %v314_v2  ;;  %297 = vmatprep.subr.bf16.mxu1 %v314_v2  ;;  %v319_v7 = vld [vmem:[%s421_s1 + $0x20] sm:$0xff]   ;;  %v321_v9 = vld [vmem:[%s421_s1 + $0x18] sm:$0xff]   ;;  %v323_v13 = vld [vmem:[%s421_s1 + $0x10] sm:$0xff]  }
   0x5   :  { %v330_v11 = vld [vmem:[%s422_s0 + $0x4] ss:$8 sps:$4 sm:$0xff]   ;;  %v333_v12 = vld [vmem:[%s422_s0 + $0x14] ss:$8 sps:$4 sm:$0xff]   ;;  %v328_v18 = vld [vmem:[%s422_s0] ss:$8 sps:$4 sm:$0xff]  }
   0x6   :  { %v324_v14 = vld [vmem:[%s421_s1 + $0x48] sm:$0xff]   ;;  %208 = vmatprep.mubr.bf16.mxu0 %v330_v11  ;;  %216 = vmatprep.mubr.bf16.mxu1 %v333_v12  ;;  %v326_v16 = vld [vmem:[%s421_s1 + $0x40] sm:$0xff]   ;;  %v331_v19 = vld [vmem:[%s422_s0 + $0x10] ss:$8 sps:$4 sm:$0xff]  }
   0x7   :  { %271 = vmatpush3.bf16.msra.mxu0 %v315_v3  ;;  %305 = vmatpush3.bf16.msra.mxu1 %v315_v3  ;;  %v325_v15 = vld [vmem:[%s421_s1 + $0x8] sm:$0xff]   ;;  %v327_v17 = vld [vmem:[%s421_s1] sm:$0xff]  }
   0x8   :  { %272 = vmatprep.subr.bf16.mxu0 %v316_v4  ;;  %298 = vmatprep.subr.bf16.mxu1 %v316_v4 }
   0xb   :  { %273 = vmatpush3.bf16.msra.mxu0 %v317_v5  ;;  %306 = vmatpush3.bf16.msra.mxu1 %v317_v5 }
   0xc   :  { %274 = vmatprep.subr.bf16.mxu0 %v318_v6  ;;  %299 = vmatprep.subr.bf16.mxu1 %v318_v6 }
   0xf   :  { %275 = vmatpush3.bf16.msra.mxu0 %v319_v7  ;;  %307 = vmatpush3.bf16.msra.mxu1 %v319_v7 }
  0x10   :  { %276 = vmatprep.subr.bf16.mxu0 %v320_v8  ;;  %300 = vmatprep.subr.bf16.mxu1 %v320_v8 }
  0x13   :  { %277 = vmatpush3.bf16.msra.mxu0 %v321_v9  ;;  %308 = vmatpush3.bf16.msra.mxu1 %v321_v9 }
  0x14   :  { %278 = vmatprep.subr.bf16.mxu0 %v322_v10  ;;  %301 = vmatprep.subr.bf16.mxu1 %v322_v10 }
  0x17   :  { %279 = vmatpush3.bf16.msra.mxu0 %v323_v13  ;;  %309 = vmatpush3.bf16.msra.mxu1 %v323_v13 }
  0x18   :  { %280 = vmatprep.subr.bf16.mxu0 %v324_v14  ;;  %302 = vmatprep.subr.bf16.mxu1 %v324_v14 }
  0x1b   :  { %281 = vmatpush3.bf16.msra.mxu0 %v325_v15  ;;  %310 = vmatpush3.bf16.msra.mxu1 %v325_v15 }
  0x1c   :  { %282 = vmatprep.subr.bf16.mxu0 %v326_v16  ;;  %303 = vmatprep.subr.bf16.mxu1 %v326_v16 }
  0x1f   :  { %283 = vmatpush3.bf16.msra.mxu0 %v327_v17  ;;  %311 = vmatpush3.bf16.msra.mxu1 %v327_v17 }
  0x22   :  { %209 = vmatmul.mubr.bf16.vlgmr.msra.gmra.mxu0 %v328_v18  ;;  %217 = vmatmul.mubr.bf16.vlgmr.msra.gmra.mxu1 %v331_v19 }
  0xe2   :  { %v284_v20 = vpop.f32.mrf.mxu0  ;;  %v290_v21 = vpop.f32.mrf.mxu1 }
  0xe4   :  { %v285_v22 = vpop.f32.mrf.mxu0  ;;  %v291_v23 = vpop.f32.mrf.mxu1 }
  0xe5   :  { %v286_v24 = vadd.f32 %v285_v22, %v284_v20  ;;  %v292_v25 = vadd.f32 %v291_v23, %v290_v21 }
  0xe6   :  { %v287_v26 = vpop.f32.mrf.mxu0  ;;  %v293_v27 = vpop.f32.mrf.mxu1 }
  0xe7   :  { %240 = vst [vmem:[%s423_s2] sm:$0xff] %v286_v24  ;;  %242 = vst [vmem:[%s423_s2 + $0x10] sm:$0xff] %v292_v25 }
  0xe8   :  { %v288_v28 = vpop.f32.mrf.mxu0  ;;  %v294_v29 = vpop.f32.mrf.mxu1 }
  0xe9   :  { %v289_v30 = vadd.f32 %v288_v28, %v287_v26  ;;  %v295_v31 = vadd.f32 %v294_v29, %v293_v27 }
  0xeb   :  { %241 = vst [vmem:[%s423_s2 + $0x8] sm:$0xff] %v289_v30  ;;  %243 = vst [vmem:[%s423_s2 + $0x18] sm:$0xff] %v295_v31 }

// kernel: cycle_generator_forward.49
= control target key start
LH: loop header
LB: loop body
LE: loop exit
PB: predicated region body
PF: predicated region fallthrough
CT: control target
= control target key end

     0   :  { %s419_s6 = smov 0   ;;  %s421_s7 = smov 0   ;;  %s529_s0 = inlined_call_operand.vmem [shape: f32[2,64,32], index: 0, kind: input, shape index: {}]   ;;  %s530_s1 = inlined_call_operand.vmem [shape: f32[2,64,32], index: 1, kind: output, shape index: {}]  }
   0x1   :  { %s423_s8 = smov 0  }
   0x2 LB: > { %s23_s9 = sadd.s32 1, %s403_s7  ;;  %p350_p0 = scmp.ge.s32.totalorder %s407_s8, 1  ;;  %s407_s8 = sphi %s423_s8, %s11_s8   ;;  %s403_s7 = sphi %s421_s7, %s532_s7   ;;  %s399_s6 = sphi %s419_s6, %s531_s6  }
   0x3   : > { %p25_p1 = scmp.ge.s32.totalorder %s23_s9, 2  ;;  %p106_p2 = scmp.lt.s32.totalorder %s407_s8, 3 }
   0x5   : > { %s534_s9 = smov (%p25_p1, %s23_s9), 0  ;;  %p107_p3 = pnand %p350_p0, %p106_p2 }
   0x6   : > { %p132_p4 = scmp.lt.s32.totalorder (!%p107_p3), %s399_s6, 1 }
   0x7   : > { %110 = sbr.rel (%p107_p3) target bundleno = 79 (0x4f), region = 24 }
   0xc   : > { %s536_s6 = smov (!%p132_p4, %s399_s6), 1  ;;  %vm156_vm0 = vcmask 261120  }
   0xd   : > { %s357_s10 = sshll.u32 %s536_s6, 6 }
   0xe   : > { %s139_s13 = scalar_lea.vmem %s529_s0, %s357_s10  ;;  %s502_s16 = scalar_lea.vmem %s530_s1, %s357_s10 }
   0xf   : > { %v445_v0 = vld [vmem:[%s139_s13] sm:$0xff]  ;;  %v447_v1 = vld [vmem:[%s139_s13 + $0x8] sm:$0xff]  ;;  %v449_v2 = vld [vmem:[%s139_s13 + $0x10] sm:$0xff] }
  0x10   : > { %v451_v3 = vld [vmem:[%s139_s13 + $0x18] sm:$0xff]  ;;  %v157_v4 = vsel %vm156_vm0, %v445_v0, 0.0  ;;  %v158_v5 = vsel %vm156_vm0, %v447_v1, 0.0  ;;  %v160_v6 = vsel %vm156_vm0, %v449_v2, 0.0  ;;  %v180_v7 = vmul.f32 %v445_v0, %v445_v0  ;;  %v461_v8 = vld [vmem:[%s139_s13 + $0x20] sm:$0xff]  ;;  %v469_v13 = vld [vmem:[%s139_s13 + $0x28] sm:$0xff] }
  0x11   : > { %v159_v9 = vadd.f32 %v158_v5, %v157_v4  ;;  %v162_v10 = vsel %vm156_vm0, %v451_v3, 0.0  ;;  %v181_v11 = vmul.f32 %v447_v1, %v447_v1  ;;  %v182_v12 = vmul.f32 %v449_v2, %v449_v2  ;;  %v154_v20 = vld [vmem:[%s139_s13 + $0x30] sm:$0xff]  ;;  %v155_v27 = vld [vmem:[%s139_s13 + $0x38] sm:$0xff] }
  0x12   : > { %v183_v15 = vmul.f32 %v451_v3, %v451_v3  ;;  %v164_v16 = vsel %vm156_vm0, %v461_v8, 0.0  ;;  %v184_v17 = vmul.f32 %v461_v8, %v461_v8  ;;  %v188_v18 = vsel %vm156_vm0, %v180_v7, 0.0 }
  0x13   : > { %v161_v14 = vadd.f32 %v160_v6, %v159_v9  ;;  %v189_v19 = vsel %vm156_vm0, %v181_v11, 0.0  ;;  %v191_v23 = vsel %vm156_vm0, %v182_v12, 0.0  ;;  %v166_v24 = vsel %vm156_vm0, %v469_v13, 0.0 }
  0x14   : > { %v190_v22 = vadd.f32 %v189_v19, %v188_v18  ;;  %v185_v25 = vmul.f32 %v469_v13, %v469_v13  ;;  %v193_v26 = vsel %vm156_vm0, %v183_v15, 0.0  ;;  %v168_v30 = vsel %vm156_vm0, %v154_v20, 0.0 }
  0x15   : > { %v163_v21 = vadd.f32 %v162_v10, %v161_v14  ;;  %v186_v31 = vmul.f32 %v154_v20, %v154_v20  ;;  %v195_v32 = vsel %vm156_vm0, %v184_v17, 0.0  ;;  %v170_v35 = vsel %vm156_vm0, %v155_v27, 0.0 }
  0x16   : > { %v192_v29 = vadd.f32 %v191_v23, %v190_v22  ;;  %v187_v36 = vmul.f32 %v155_v27, %v155_v27  ;;  %v197_v37 = vsel %vm156_vm0, %v185_v25, 0.0 }
  0x17   : > { %v165_v28 = vadd.f32 %v164_v16, %v163_v21  ;;  %v199_v40 = vsel %vm156_vm0, %v186_v31, 0.0 }
  0x18   : > { %v194_v34 = vadd.f32 %v193_v26, %v192_v29  ;;  %v201_v43 = vsel %vm156_vm0, %v187_v36, 0.0 }
  0x19   : > { %v167_v33 = vadd.f32 %v166_v24, %v165_v28 }
  0x1a   : > { %v196_v39 = vadd.f32 %v195_v32, %v194_v34 }
  0x1b   : > { %v169_v38 = vadd.f32 %v168_v30, %v167_v33 }
  0x1c   : > { %v198_v42 = vadd.f32 %v197_v37, %v196_v39 }
  0x1d   : > { %v171_v41 = vadd.f32 %v170_v35, %v169_v38 }
  0x1e   : > { %v200_v45 = vadd.f32 %v199_v40, %v198_v42 }
  0x1f   : > { %v172_v44 = vrot.slane %v171_v41, 4 }
  0x20   : > { %v202_v47 = vadd.f32 %v201_v43, %v200_v45 }
  0x21   : > { %v173_v46 = vadd.f32 %v172_v44, %v171_v41 }
  0x22   : > { %v203_v49 = vrot.slane %v202_v47, 4 }
  0x23   : > { %v174_v48 = vrot.slane %v173_v46, 2 }
  0x24   : > { %v204_v51 = vadd.f32 %v203_v49, %v202_v47 }
  0x25   : > { %v175_v50 = vadd.f32 %v174_v48, %v173_v46 }
  0x26   : > { %v205_v53 = vrot.slane %v204_v51, 2 }
  0x27   : > { %v176_v52 = vrot.slane %v175_v50, 1 }
  0x28   : > { %v206_v55 = vadd.f32 %v205_v53, %v204_v51 }
  0x29   : > { %v177_v54 = vadd.f32 %v176_v52, %v175_v50 }
  0x2a   : > { %v207_v57 = vrot.slane %v206_v55, 1 }
  0x2b   : > { %v179_v56 = vmul.f32 0.015625, %v177_v54 }
  0x2c   : > { %v208_v58 = vadd.f32 %v207_v57, %v206_v55 }
  0x2d   : > { %v210_v59 = vmul.f32 %v179_v56, %v179_v56  ;;  %v213_v4 = vsub.f32 %v445_v0, %v179_v56  ;;  %v214_v5 = vsub.f32 %v447_v1, %v179_v56  ;;  %v215_v6 = vsub.f32 %v449_v2, %v179_v56 }
  0x2e   : > { %v209_v60 = vmul.f32 0.015625, %v208_v58  ;;  %v216_v7 = vsub.f32 %v451_v3, %v179_v56  ;;  %v217_v9 = vsub.f32 %v461_v8, %v179_v56  ;;  %v218_v10 = vsub.f32 %v469_v13, %v179_v56 }
  0x2f   : > { %v219_v11 = vsub.f32 %v154_v20, %v179_v56  ;;  %v220_v12 = vsub.f32 %v155_v27, %v179_v56 }
  0x30   : > { %v211_v61 = vsub.f32 %v209_v60, %v210_v59 }
  0x32   : > { %v212_v62 = vmax.f32 %v211_v61, 0.0 }
  0x34   : > { %v221_v63 = vadd.f32 1e-05, %v212_v62 }
  0x36   : > { %383 = vrsqrt.f32 %v221_v63 }
  0x43   : > { %v384_v14 = vpop.eup %383 }
  0x44   : > { %v223_v15 = vmul.f32 %v384_v14, %v213_v4  ;;  %v224_v16 = vmul.f32 %v384_v14, %v214_v5  ;;  %v225_v17 = vmul.f32 %v384_v14, %v215_v6  ;;  %v226_v18 = vmul.f32 %v384_v14, %v216_v7 }
  0x45   : > { %v227_v19 = vmul.f32 %v384_v14, %v217_v9  ;;  %v228_v0 = vmul.f32 %v384_v14, %v218_v10  ;;  %v229_v21 = vmul.f32 %v384_v14, %v219_v11  ;;  %v230_v1 = vmul.f32 %v384_v14, %v220_v12 }
  0x46   : > { %vm231_vm1 = vcmp.gt.f32.partialorder %v223_v15, 0.0  ;;  %v239_v2 = vmul.f32 0.2, %v223_v15  ;;  %vm232_vm2 = vcmp.gt.f32.partialorder %v224_v16, 0.0  ;;  %v240_v3 = vmul.f32 0.2, %v224_v16 }
  0x47   : > { %vm233_vm3 = vcmp.gt.f32.partialorder %v225_v17, 0.0  ;;  %v241_v8 = vmul.f32 0.2, %v225_v17  ;;  %vm234_vm4 = vcmp.gt.f32.partialorder %v226_v18, 0.0  ;;  %v242_v13 = vmul.f32 0.2, %v226_v18 }
  0x48   : > { %v247_v20 = vsel %vm231_vm1, %v223_v15, %v239_v2  ;;  %v248_v22 = vsel %vm232_vm2, %v224_v16, %v240_v3  ;;  %vm235_vm5 = vcmp.gt.f32.partialorder %v227_v19, 0.0  ;;  %v243_v23 = vmul.f32 0.2, %v227_v19 }
  0x49   : > { %255 = vst.msk [vmem:[%s502_s16] sm:$0xff] %vm156_vm0, %v247_v20  ;;  %256 = vst.msk [vmem:[%s502_s16 + $0x8] sm:$0xff] %vm156_vm0, %v248_v22  ;;  %v249_v24 = vsel %vm233_vm3, %v225_v17, %v241_v8  ;;  %v250_v25 = vsel %vm234_vm4, %v226_v18, %v242_v13  ;;  %vm236_vm6 = vcmp.gt.f32.partialorder %v228_v0, 0.0  ;;  %v244_v26 = vmul.f32 0.2, %v228_v0 }
  0x4a   : > { %257 = vst.msk [vmem:[%s502_s16 + $0x10] sm:$0xff] %vm156_vm0, %v249_v24  ;;  %258 = vst.msk [vmem:[%s502_s16 + $0x18] sm:$0xff] %vm156_vm0, %v250_v25  ;;  %v251_v27 = vsel %vm235_vm5, %v227_v19, %v243_v23  ;;  %vm237_vm7 = vcmp.gt.f32.partialorder %v229_v21, 0.0  ;;  %v245_v28 = vmul.f32 0.2, %v229_v21  ;;  %vm238_vm8 = vcmp.gt.f32.partialorder %v230_v1, 0.0 }
  0x4b   : > { %259 = vst.msk [vmem:[%s502_s16 + $0x20] sm:$0xff] %vm156_vm0, %v251_v27  ;;  %v252_v29 = vsel %vm236_vm6, %v228_v0, %v244_v26  ;;  %v246_v30 = vmul.f32 0.2, %v230_v1 }
  0x4c   : > { %260 = vst.msk [vmem:[%s502_s16 + $0x28] sm:$0xff] %vm156_vm0, %v252_v29  ;;  %v253_v31 = vsel %vm237_vm7, %v229_v21, %v245_v28 }
  0x4d   : > { %261 = vst.msk [vmem:[%s502_s16 + $0x30] sm:$0xff] %vm156_vm0, %v253_v31  ;;  %v254_v32 = vsel %vm238_vm8, %v230_v1, %v246_v30 }
  0x4e   : > { %262 = vst.msk [vmem:[%s502_s16 + $0x38] sm:$0xff] %vm156_vm0, %v254_v32 }
  0x4f PF: > { %s11_s8 = sadd.s32 1, %s407_s8   ;;  %s531_s6 = smov %s403_s7 }
  0x50   : > { %p8_p5 = scmp.ge.s32.totalorder %s11_s8, 4   ;;  %s532_s7 = smov %s534_s9 }
  0x52   :  { %10 = sbr.rel (!%p8_p5) target bundleno = 2 (0x2), region = 54 }

// kernel: cycle_generator_forward.50
= control target key start
LH: loop header
LB: loop body
LE: loop exit
PB: predicated region body
PF: predicated region fallthrough
CT: control target
= control target key end

     0   :  { %s599_s1 = inlined_call_operand.vmem [shape: bf16[128,128], index: 1, kind: input, shape index: {}]   ;;  %s600_s0 = inlined_call_operand.vmem [shape: bf16[128,128], index: 0, kind: input, shape index: {}]   ;;  %s601_s2 = inlined_call_operand.vmem [shape: f32[128,128], index: 2, kind: output, shape index: {}]  }
   0x1   :  { %v440_v0 = vld [vmem:[%s599_s1 + $0x38] sm:$0xff]   ;;  %v441_v1 = vld [vmem:[%s599_s1 + $0x30] sm:$0xff]   ;;  %v442_v2 = vld [vmem:[%s599_s1 + $0x28] sm:$0xff]  }
   0x2   :  { %392 = vmatprep.subr.bf16.mxu0 %v440_v0  ;;  %424 = vmatprep.subr.bf16.mxu1 %v440_v0  ;;  %v443_v3 = vld [vmem:[%s599_s1 + $0x20] sm:$0xff]   ;;  %v444_v6 = vld [vmem:[%s599_s1 + $0x18] sm:$0xff]   ;;  %v445_v7 = vld [vmem:[%s599_s1 + $0x10] sm:$0xff]  }
   0x3   :  { %393 = vmatpush3.bf16.msra.mxu0 %v440_v0  ;;  %432 = vmatpush3.bf16.msra.mxu1 %v440_v0  ;;  %v448_v4 = vld [vmem:[%s600_s0] sm:$0xff]   ;;  %v446_v8 = vld [vmem:[%s599_s1 + $0x8] sm:$0xff]   ;;  %v452_v12 = vld [vmem:[%s600_s0 + $0x10] sm:$0xff]  }
   0x4   :  { %394 = vmatprep.subr.bf16.mxu0 %v441_v1  ;;  %425 = vmatprep.subr.bf16.mxu1 %v441_v1  ;;  %v449_v5 = vld [vmem:[%s600_s0 + $0x20] sm:$0xff]   ;;  %v450_v10 = vld [vmem:[%s600_s0 + $0x8] sm:$0xff]   ;;  %v453_v13 = vld [vmem:[%s600_s0 + $0x30] sm:$0xff]  }
   0x5   :  { %408 = vmatprep.mubr.bf16.mxu0 %v448_v4  ;;  %416 = vmatprep.mubr.bf16.mxu1 %v449_v5  ;;  %v447_v9 = vld [vmem:[%s599_s1] sm:$0xff]   ;;  %v451_v11 = vld [vmem:[%s600_s0 + $0x28] sm:$0xff]   ;;  %v454_v14 = vld [vmem:[%s600_s0 + $0x18] sm:$0xff]  }
   0x6   :  { %v455_v15 = vld [vmem:[%s600_s0 + $0x38] sm:$0xff]  }
   0x7   :  { %395 = vmatpush3.bf16.msra.mxu0 %v441_v1  ;;  %433 = vmatpush3.bf16.msra.mxu1 %v441_v1 }
   0x8   :  { %396 = vmatprep.subr.bf16.mxu0 %v442_v2  ;;  %426 = vmatprep.subr.bf16.mxu1 %v442_v2 }
   0xb   :  { %397 = vmatpush3.bf16.msra.mxu0 %v442_v2  ;;  %434 = vmatpush3.bf16.msra.mxu1 %v442_v2 }
   0xc   :  { %398 = vmatprep.subr.bf16.mxu0 %v443_v3  ;;  %427 = vmatprep.subr.bf16.mxu1 %v443_v3 }
   0xf   :  { %399 = vmatpush3.bf16.msra.mxu0 %v443_v3  ;;  %435 = vmatpush3.bf16.msra.mxu1 %v443_v3 }
  0x10   :  { %400 = vmatprep.subr.bf16.mxu0 %v444_v6  ;;  %428 = vmatprep.subr.bf16.mxu1 %v444_v6 }
  0x13   :  { %401 = vmatpush3.bf16.msra.mxu0 %v444_v6  ;;  %436 = vmatpush3.bf16.msra.mxu1 %v444_v6 }
  0x14   :  { %402 = vmatprep.subr.bf16.mxu0 %v445_v7  ;;  %429 = vmatprep.subr.bf16.mxu1 %v445_v7 }
  0x17   :  { %403 = vmatpush3.bf16.msra.mxu0 %v445_v7  ;;  %437 = vmatpush3.bf16.msra.mxu1 %v445_v7 }
  0x18   :  { %404 = vmatprep.subr.bf16.mxu0 %v446_v8  ;;  %430 = vmatprep.subr.bf16.mxu1 %v446_v8 }
  0x1b   :  { %405 = vmatpush3.bf16.msra.mxu0 %v446_v8  ;;  %438 = vmatpush3.bf16.msra.mxu1 %v446_v8 }
  0x1c   :  { %406 = vmatprep.subr.bf16.mxu0 %v447_v9  ;;  %431 = vmatprep.subr.bf16.mxu1 %v447_v9 }
  0x1f   :  { %407 = vmatpush3.bf16.msra.mxu0 %v447_v9  ;;  %439 = vmatpush3.bf16.msra.mxu1 %v447_v9 }
  0x22   :  { %409 = vmatmul.mubr.bf16.vlgmr.msra.gmra.mxu0 %v450_v10  ;;  %417 = vmatmul.mubr.bf16.vlgmr.msra.gmra.mxu1 %v451_v11 }
  0x23   :  { %412 = vmatprep.mubr.bf16.mxu0 %v452_v12  ;;  %420 = vmatprep.mubr.bf16.mxu1 %v453_v13 }
  0x2a   :  { %413 = vmatmul.mubr.bf16.gmra.mxu0 %v454_v14  ;;  %421 = vmatmul.mubr.bf16.gmra.mxu1 %v455_v15 }
  0xe2   :  { %v410_v16 = vpop.f32.mrf.mxu0  ;;  %v418_v17 = vpop.f32.mrf.mxu1 }
  0xe3   :  { %456 = vtanh.f32 %v410_v16 }
  0xe4   :  { %458 = vtanh.f32 %v418_v17  ;;  %v210_v18 = vpop.f32.mrf.mxu0  ;;  %v242_v19 = vpop.f32.mrf.mxu1 }
  0xe5   :  { %460 = vtanh.f32 %v210_v18 }
  0xe6   :  { %462 = vtanh.f32 %v242_v19  ;;  %v411_v20 = vpop.f32.mrf.mxu0  ;;  %v419_v21 = vpop.f32.mrf.mxu1 }
  0xe7   :  { %464 = vtanh.f32 %v411_v20 }
  0xe8   :  { %466 = vtanh.f32 %v419_v21  ;;  %v213_v22 = vpop.f32.mrf.mxu0  ;;  %v245_v23 = vpop.f32.mrf.mxu1 }
  0xe9   :  { %468 = vtanh.f32 %v213_v22 }
  0xea   :  { %470 = vtanh.f32 %v245_v23  ;;  %v414_v24 = vpop.f32.mrf.mxu0  ;;  %v422_v25 = vpop.f32.mrf.mxu1 }
  0xeb   :  { %472 = vtanh.f32 %v414_v24 }
  0xec   :  { %474 = vtanh.f32 %v422_v25  ;;  %v226_v26 = vpop.f32.mrf.mxu0  ;;  %v258_v27 = vpop.f32.mrf.mxu1 }
  0xed   :  { %476 = vtanh.f32 %v226_v26 }
  0xee   :  { %478 = vtanh.f32 %v258_v27  ;;  %v415_v28 = vpop.f32.mrf.mxu0  ;;  %v423_v29 = vpop.f32.mrf.mxu1 }
  0xef   :  { %480 = vtanh.f32 %v415_v28 }
  0xf0   :  { %v457_v30 = vpop.eup %456  ;;  %482 = vtanh.f32 %v423_v29  ;;  %v229_v31 = vpop.f32.mrf.mxu0 }
  0xf1   :  { %v261_v32 = vpop.f32.mrf.mxu1  ;;  %v459_v33 = vpop.eup %458  ;;  %342 = vst [vmem:[%s601_s2 + $0x10] sm:$0xff] %v457_v30  ;;  %484 = vtanh.f32 %v229_v31 }
  0xf2   :  { %v461_v34 = vpop.eup %460  ;;  %350 = vst [vmem:[%s601_s2 + $0x50] sm:$0xff] %v459_v33  ;;  %486 = vtanh.f32 %v261_v32 }
  0xf3   :  { %v463_v35 = vpop.eup %462  ;;  %340 = vst [vmem:[%s601_s2] sm:$0xff] %v461_v34 }
  0xf4   :  { %v465_v36 = vpop.eup %464  ;;  %348 = vst [vmem:[%s601_s2 + $0x40] sm:$0xff] %v463_v35 }
  0xf5   :  { %v467_v37 = vpop.eup %466  ;;  %343 = vst [vmem:[%s601_s2 + $0x18] sm:$0xff] %v465_v36 }
  0xf6   :  { %v469_v38 = vpop.eup %468  ;;  %351 = vst [vmem:[%s601_s2 + $0x58] sm:$0xff] %v467_v37 }
  0xf7   :  { %v471_v39 = vpop.eup %470  ;;  %341 = vst [vmem:[%s601_s2 + $0x8] sm:$0xff] %v469_v38 }
  0xf8   :  { %v473_v40 = vpop.eup %472  ;;  %349 = vst [vmem:[%s601_s2 + $0x48] sm:$0xff] %v471_v39 }
  0xf9   :  { %v475_v41 = vpop.eup %474  ;;  %346 = vst [vmem:[%s601_s2 + $0x30] sm:$0xff] %v473_v40 }
  0xfa   :  { %v477_v42 = vpop.eup %476  ;;  %354 = vst [vmem:[%s601_s2 + $0x70] sm:$0xff] %v475_v41 }
  0xfb   :  { %v479_v43 = vpop.eup %478  ;;  %344 = vst [vmem:[%s601_s2 + $0x20] sm:$0xff] %v477_v42 }
  0xfc   :  { %v481_v44 = vpop.eup %480  ;;  %352 = vst [vmem:[%s601_s2 + $0x60] sm:$0xff] %v479_v43 }
  0xfd   :  { %v483_v45 = vpop.eup %482  ;;  %347 = vst [vmem:[%s601_s2 + $0x38] sm:$0xff] %v481_v44 }
  0xfe   :  { %v485_v46 = vpop.eup %484  ;;  %355 = vst [vmem:[%s601_s2 + $0x78] sm:$0xff] %v483_v45 }
  0xff   :  { %v487_v47 = vpop.eup %486  ;;  %345 = vst [vmem:[%s601_s2 + $0x28] sm:$0xff] %v485_v46 }
 0x100   :  { %353 = vst [vmem:[%s601_s2 + $0x68] sm:$0xff] %v487_v47 }

</bundles_post_ra>
